<compile_context>
chip_gen: v5e
topology: v5e:2x2
jax: 0.10.0
libtpu: 0.0.40
codegen_flags: <defaults>
</compile_context>

<pallas_src>
import functools

import jax
import jax.numpy as jnp
import numpy as np
from jax.experimental import pallas as pl
from jax.experimental.pallas import tpu as pltpu


def _crnn_cell_kernel(x_ref, w_ref, b_ref, o_ref, *, k, H, W):
    """One batch element per grid step.

    x_ref : (1, H+2p, W+2p, C_total)  spatially padded, channel-concatenated
                                      [input ; hidden ; hidden_iteration], NHWC
    w_ref : (k, k, C_total, ch)       HWIO weights (i2h/h2h/ih2ih stacked along
                                      the input-channel axis)
    b_ref : (1, ch)                   pre-summed bias of the three convs
    o_ref : (1, ch, H*W)              channel-major (NCHW, spatial flattened)
                                      -> last dim H*W is lane-dense
    """
    ch = o_ref.shape[1]
    c_total = x_ref.shape[-1]

    acc = jnp.zeros((H * W, ch), jnp.float32)
    for dy in range(k):              # static unroll: k*k shifted-window matmuls
        for dx in range(k):
            patch = x_ref[0, dy:dy + H, dx:dx + W, :].reshape(H * W, c_total)
            acc = acc + jnp.dot(patch, w_ref[dy, dx],
                                preferred_element_type=jnp.float32)

    acc = acc + b_ref[...].astype(jnp.float32)    # single bias add
    acc = jnp.maximum(acc, 0.0)                   # fused ReLU
    # One small (H*W, ch) -> (ch, H*W) transpose so the store is unmasked
    # (lane-dense) and the kernel emits NCHW directly.
    o_ref[0] = acc.T.astype(o_ref.dtype)


def crnn_cell(x, hidden_iteration, hidden, params, kernel_size):
    """PyTorch-convention forward: all tensors NCHW, returns NCHW."""
    k = kernel_size
    assert k % 2 == 1, "only odd kernel_size matches PyTorch padding=k//2"
    p = k // 2
    B, cin, H, W = x.shape
    ch = hidden.shape[1]
    c_total = cin + 2 * ch
    Hp, Wp = H + 2 * p, W + 2 * p

    # Channel-concatenate the three conv inputs, go NHWC, pad spatially once.
    cat = jnp.concatenate([x, hidden, hidden_iteration], axis=1)
    cat = jnp.transpose(cat, (0, 2, 3, 1))                       # NHWC
    cat = jnp.pad(cat, ((0, 0), (p, p), (p, p), (0, 0)))
    # TODO(synk): for large H/W, fold the halo handling into the kernel
    # (masked edge taps) instead of this extra pre-pad pass over HBM.

    # Stack weights along the HWIO input-channel axis; sum the biases.
    w_cat = jnp.concatenate(
        [params["w_i2h"], params["w_h2h"], params["w_ih2ih"]], axis=2)
    b_sum = (params["b_i2h"] + params["b_h2h"]
             + params["b_ih2ih"]).reshape(1, ch)

    kernel = functools.partial(_crnn_cell_kernel, k=k, H=H, W=W)

    out = pl.pallas_call(
        kernel,
        out_shape=jax.ShapeDtypeStruct((B, ch, H * W), x.dtype),
        grid_spec=pltpu.PrefetchScalarGridSpec(
            num_scalar_prefetch=0,
            grid=(B,),
            in_specs=[
                pl.BlockSpec((1, Hp, Wp, c_total), lambda b: (b, 0, 0, 0)),
                pl.BlockSpec((k, k, c_total, ch), lambda b: (0, 0, 0, 0)),
                pl.BlockSpec((1, ch), lambda b: (0, 0)),
            ],
            out_specs=pl.BlockSpec((1, ch, H * W), lambda b: (b, 0, 0)),
        ),
        compiler_params=pltpu.CompilerParams(
            dimension_semantics=("parallel",)),
    )(cat, w_cat, b_sum)

    return out.reshape(B, ch, H, W)               # free reshape -> NCHW


def init_params(key, input_size, hidden_size, kernel_size):
    """Deterministic init matching PyTorch Conv2d default (uniform +/-1/sqrt(fan_in))."""
    k = kernel_size
    keys = jax.random.split(key, 6)

    def conv_init(wkey, bkey, cin, cout):
        fan_in = cin * k * k
        bound = 1.0 / np.sqrt(fan_in)
        w_oihw = jax.random.uniform(wkey, (cout, cin, k, k), jnp.float32,
                                    -bound, bound)
        w_hwio = jnp.transpose(w_oihw, (2, 3, 1, 0))
        b = jax.random.uniform(bkey, (cout,), jnp.float32, -bound, bound)
        return w_hwio, b

    w_i, b_i = conv_init(keys[0], keys[1], input_size, hidden_size)
    w_h, b_h = conv_init(keys[2], keys[3], hidden_size, hidden_size)
    w_ih, b_ih = conv_init(keys[4], keys[5], hidden_size, hidden_size)
    return {"w_i2h": w_i, "b_i2h": b_i,
            "w_h2h": w_h, "b_h2h": b_h,
            "w_ih2ih": w_ih, "b_ih2ih": b_ih}


def reference_nchw(x, hidden_iteration, hidden, params):
    """Pure-JAX reference (lax conv) for correctness checking (NCHW)."""
    def conv(t, w, b):
        y = jax.lax.conv_general_dilated(
            t, w, window_strides=(1, 1), padding="SAME",
            dimension_numbers=("NCHW", "HWIO", "NCHW"))
        return y + b.reshape(1, -1, 1, 1)
    s = (conv(x, params["w_i2h"], params["b_i2h"]) +
         conv(hidden, params["w_h2h"], params["b_h2h"]) +
         conv(hidden_iteration, params["w_ih2ih"], params["b_ih2ih"]))
    return jnp.maximum(s, 0.0)


if __name__ == "__main__":
    B, Cin, Ch, H, W, K = 2, 4, 32, 16, 16, 3

    key = jax.random.PRNGKey(0)
    k_x, k_hi, k_h, k_p = jax.random.split(key, 4)

    # PyTorch-convention inputs (NCHW)
    x = jax.random.normal(k_x, (B, Cin, H, W), jnp.float32)
    hidden_iteration = jax.random.normal(k_hi, (B, Ch, H, W), jnp.float32)
    hidden = jax.random.normal(k_h, (B, Ch, H, W), jnp.float32)

    params = init_params(k_p, Cin, Ch, K)

    out = crnn_cell(x, hidden_iteration, hidden, params, K)
    out = jax.block_until_ready(out)
    assert out.shape == (B, Ch, H, W)

    # correctness check against a plain-JAX reference
    ref = reference_nchw(x, hidden_iteration, hidden, params)
    np.testing.assert_allclose(np.asarray(out), np.asarray(ref),
                               rtol=1e-2, atol=1e-2)

    print("KERNEL_OK")
</pallas_src>

<mosaic_0001>
module attributes {stable_mosaic.version = 11 : i64} {
  func.func @_crnn_cell_kernel(%arg0: i32, %arg1: memref<1x18x18x68xf32, #tpu.memory_space<vmem>>, %arg2: memref<3x3x68x32xf32, #tpu.memory_space<vmem>>, %arg3: memref<1x32xf32, #tpu.memory_space<vmem>>, %arg4: memref<1x32x256xf32, #tpu.memory_space<vmem>>) attributes {dimension_semantics = [#tpu.dimension_semantics<parallel>], iteration_bounds = array<i64: 2>, scalar_prefetch = 0 : i64, scratch_operands = 0 : i64, tpu.core_type = #tpu.core_type<tc>, window_params = [{transform_indices = @transform_0, window_bounds = array<i64: 1, 18, 18, 68>}, {pipeline_mode = #tpu.pipeline_mode<synchronous>, transform_indices = @transform_1, window_bounds = array<i64: 3, 3, 68, 32>}, {pipeline_mode = #tpu.pipeline_mode<synchronous>, transform_indices = @transform_2, window_bounds = array<i64: 1, 32>}, {transform_indices = @transform_3, window_bounds = array<i64: 1, 32, 256>}]} {
    %cst = arith.constant 0.000000e+00 : f32
    %0 = vector.broadcast %cst : f32 to vector<256x32xf32>
    %c0 = arith.constant 0 : index
    %c0_0 = arith.constant 0 : index
    %c0_1 = arith.constant 0 : index
    %c0_2 = arith.constant 0 : index
    %1 = vector.load %arg1[%c0, %c0_0, %c0_1, %c0_2] : memref<1x18x18x68xf32, #tpu.memory_space<vmem>>, vector<1x16x16x68xf32>
    %2 = vector.shape_cast %1 : vector<1x16x16x68xf32> to vector<16x16x68xf32>
    %3 = vector.shape_cast %2 : vector<16x16x68xf32> to vector<256x68xf32>
    %c0_3 = arith.constant 0 : index
    %c0_4 = arith.constant 0 : index
    %c0_5 = arith.constant 0 : index
    %c0_6 = arith.constant 0 : index
    %4 = vector.load %arg2[%c0_3, %c0_4, %c0_5, %c0_6] : memref<3x3x68x32xf32, #tpu.memory_space<vmem>>, vector<1x1x68x32xf32>
    %5 = vector.shape_cast %4 : vector<1x1x68x32xf32> to vector<68x32xf32>
    %cst_7 = arith.constant dense<0.000000e+00> : vector<256x32xf32>
    %6 = tpu.matmul %3, %5, %cst_7 {dimension_numbers = #tpu.dot_dimension_numbers<[1], [0], [0], [1], [0, 0, 1, 1], [], []>} : vector<256x68xf32>, vector<68x32xf32>, vector<256x32xf32> -> vector<256x32xf32>
    %7 = arith.addf %0, %6 : vector<256x32xf32>
    %c0_8 = arith.constant 0 : index
    %c0_9 = arith.constant 0 : index
    %c1 = arith.constant 1 : index
    %c0_10 = arith.constant 0 : index
    %8 = vector.load %arg1[%c0_8, %c0_9, %c1, %c0_10] : memref<1x18x18x68xf32, #tpu.memory_space<vmem>>, vector<1x16x16x68xf32>
    %9 = vector.shape_cast %8 : vector<1x16x16x68xf32> to vector<16x16x68xf32>
    %10 = vector.shape_cast %9 : vector<16x16x68xf32> to vector<256x68xf32>
    %c0_11 = arith.constant 0 : index
    %c1_12 = arith.constant 1 : index
    %c0_13 = arith.constant 0 : index
    %c0_14 = arith.constant 0 : index
    %11 = vector.load %arg2[%c0_11, %c1_12, %c0_13, %c0_14] : memref<3x3x68x32xf32, #tpu.memory_space<vmem>>, vector<1x1x68x32xf32>
    %12 = vector.shape_cast %11 : vector<1x1x68x32xf32> to vector<68x32xf32>
    %cst_15 = arith.constant dense<0.000000e+00> : vector<256x32xf32>
    %13 = tpu.matmul %10, %12, %cst_15 {dimension_numbers = #tpu.dot_dimension_numbers<[1], [0], [0], [1], [0, 0, 1, 1], [], []>} : vector<256x68xf32>, vector<68x32xf32>, vector<256x32xf32> -> vector<256x32xf32>
    %14 = arith.addf %7, %13 : vector<256x32xf32>
    %c0_16 = arith.constant 0 : index
    %c0_17 = arith.constant 0 : index
    %c2 = arith.constant 2 : index
    %c0_18 = arith.constant 0 : index
    %15 = vector.load %arg1[%c0_16, %c0_17, %c2, %c0_18] : memref<1x18x18x68xf32, #tpu.memory_space<vmem>>, vector<1x16x16x68xf32>
    %16 = vector.shape_cast %15 : vector<1x16x16x68xf32> to vector<16x16x68xf32>
    %17 = vector.shape_cast %16 : vector<16x16x68xf32> to vector<256x68xf32>
    %c0_19 = arith.constant 0 : index
    %c2_20 = arith.constant 2 : index
    %c0_21 = arith.constant 0 : index
    %c0_22 = arith.constant 0 : index
    %18 = vector.load %arg2[%c0_19, %c2_20, %c0_21, %c0_22] : memref<3x3x68x32xf32, #tpu.memory_space<vmem>>, vector<1x1x68x32xf32>
    %19 = vector.shape_cast %18 : vector<1x1x68x32xf32> to vector<68x32xf32>
    %cst_23 = arith.constant dense<0.000000e+00> : vector<256x32xf32>
    %20 = tpu.matmul %17, %19, %cst_23 {dimension_numbers = #tpu.dot_dimension_numbers<[1], [0], [0], [1], [0, 0, 1, 1], [], []>} : vector<256x68xf32>, vector<68x32xf32>, vector<256x32xf32> -> vector<256x32xf32>
    %21 = arith.addf %14, %20 : vector<256x32xf32>
    %c0_24 = arith.constant 0 : index
    %c1_25 = arith.constant 1 : index
    %c0_26 = arith.constant 0 : index
    %c0_27 = arith.constant 0 : index
    %22 = vector.load %arg1[%c0_24, %c1_25, %c0_26, %c0_27] : memref<1x18x18x68xf32, #tpu.memory_space<vmem>>, vector<1x16x16x68xf32>
    %23 = vector.shape_cast %22 : vector<1x16x16x68xf32> to vector<16x16x68xf32>
    %24 = vector.shape_cast %23 : vector<16x16x68xf32> to vector<256x68xf32>
    %c1_28 = arith.constant 1 : index
    %c0_29 = arith.constant 0 : index
    %c0_30 = arith.constant 0 : index
    %c0_31 = arith.constant 0 : index
    %25 = vector.load %arg2[%c1_28, %c0_29, %c0_30, %c0_31] : memref<3x3x68x32xf32, #tpu.memory_space<vmem>>, vector<1x1x68x32xf32>
    %26 = vector.shape_cast %25 : vector<1x1x68x32xf32> to vector<68x32xf32>
    %cst_32 = arith.constant dense<0.000000e+00> : vector<256x32xf32>
    %27 = tpu.matmul %24, %26, %cst_32 {dimension_numbers = #tpu.dot_dimension_numbers<[1], [0], [0], [1], [0, 0, 1, 1], [], []>} : vector<256x68xf32>, vector<68x32xf32>, vector<256x32xf32> -> vector<256x32xf32>
    %28 = arith.addf %21, %27 : vector<256x32xf32>
    %c0_33 = arith.constant 0 : index
    %c1_34 = arith.constant 1 : index
    %c1_35 = arith.constant 1 : index
    %c0_36 = arith.constant 0 : index
    %29 = vector.load %arg1[%c0_33, %c1_34, %c1_35, %c0_36] : memref<1x18x18x68xf32, #tpu.memory_space<vmem>>, vector<1x16x16x68xf32>
    %30 = vector.shape_cast %29 : vector<1x16x16x68xf32> to vector<16x16x68xf32>
    %31 = vector.shape_cast %30 : vector<16x16x68xf32> to vector<256x68xf32>
    %c1_37 = arith.constant 1 : index
    %c1_38 = arith.constant 1 : index
    %c0_39 = arith.constant 0 : index
    %c0_40 = arith.constant 0 : index
    %32 = vector.load %arg2[%c1_37, %c1_38, %c0_39, %c0_40] : memref<3x3x68x32xf32, #tpu.memory_space<vmem>>, vector<1x1x68x32xf32>
    %33 = vector.shape_cast %32 : vector<1x1x68x32xf32> to vector<68x32xf32>
    %cst_41 = arith.constant dense<0.000000e+00> : vector<256x32xf32>
    %34 = tpu.matmul %31, %33, %cst_41 {dimension_numbers = #tpu.dot_dimension_numbers<[1], [0], [0], [1], [0, 0, 1, 1], [], []>} : vector<256x68xf32>, vector<68x32xf32>, vector<256x32xf32> -> vector<256x32xf32>
    %35 = arith.addf %28, %34 : vector<256x32xf32>
    %c0_42 = arith.constant 0 : index
    %c1_43 = arith.constant 1 : index
    %c2_44 = arith.constant 2 : index
    %c0_45 = arith.constant 0 : index
    %36 = vector.load %arg1[%c0_42, %c1_43, %c2_44, %c0_45] : memref<1x18x18x68xf32, #tpu.memory_space<vmem>>, vector<1x16x16x68xf32>
    %37 = vector.shape_cast %36 : vector<1x16x16x68xf32> to vector<16x16x68xf32>
    %38 = vector.shape_cast %37 : vector<16x16x68xf32> to vector<256x68xf32>
    %c1_46 = arith.constant 1 : index
    %c2_47 = arith.constant 2 : index
    %c0_48 = arith.constant 0 : index
    %c0_49 = arith.constant 0 : index
    %39 = vector.load %arg2[%c1_46, %c2_47, %c0_48, %c0_49] : memref<3x3x68x32xf32, #tpu.memory_space<vmem>>, vector<1x1x68x32xf32>
    %40 = vector.shape_cast %39 : vector<1x1x68x32xf32> to vector<68x32xf32>
    %cst_50 = arith.constant dense<0.000000e+00> : vector<256x32xf32>
    %41 = tpu.matmul %38, %40, %cst_50 {dimension_numbers = #tpu.dot_dimension_numbers<[1], [0], [0], [1], [0, 0, 1, 1], [], []>} : vector<256x68xf32>, vector<68x32xf32>, vector<256x32xf32> -> vector<256x32xf32>
    %42 = arith.addf %35, %41 : vector<256x32xf32>
    %c0_51 = arith.constant 0 : index
    %c2_52 = arith.constant 2 : index
    %c0_53 = arith.constant 0 : index
    %c0_54 = arith.constant 0 : index
    %43 = vector.load %arg1[%c0_51, %c2_52, %c0_53, %c0_54] : memref<1x18x18x68xf32, #tpu.memory_space<vmem>>, vector<1x16x16x68xf32>
    %44 = vector.shape_cast %43 : vector<1x16x16x68xf32> to vector<16x16x68xf32>
    %45 = vector.shape_cast %44 : vector<16x16x68xf32> to vector<256x68xf32>
    %c2_55 = arith.constant 2 : index
    %c0_56 = arith.constant 0 : index
    %c0_57 = arith.constant 0 : index
    %c0_58 = arith.constant 0 : index
    %46 = vector.load %arg2[%c2_55, %c0_56, %c0_57, %c0_58] : memref<3x3x68x32xf32, #tpu.memory_space<vmem>>, vector<1x1x68x32xf32>
    %47 = vector.shape_cast %46 : vector<1x1x68x32xf32> to vector<68x32xf32>
    %cst_59 = arith.constant dense<0.000000e+00> : vector<256x32xf32>
    %48 = tpu.matmul %45, %47, %cst_59 {dimension_numbers = #tpu.dot_dimension_numbers<[1], [0], [0], [1], [0, 0, 1, 1], [], []>} : vector<256x68xf32>, vector<68x32xf32>, vector<256x32xf32> -> vector<256x32xf32>
    %49 = arith.addf %42, %48 : vector<256x32xf32>
    %c0_60 = arith.constant 0 : index
    %c2_61 = arith.constant 2 : index
    %c1_62 = arith.constant 1 : index
    %c0_63 = arith.constant 0 : index
    %50 = vector.load %arg1[%c0_60, %c2_61, %c1_62, %c0_63] : memref<1x18x18x68xf32, #tpu.memory_space<vmem>>, vector<1x16x16x68xf32>
    %51 = vector.shape_cast %50 : vector<1x16x16x68xf32> to vector<16x16x68xf32>
    %52 = vector.shape_cast %51 : vector<16x16x68xf32> to vector<256x68xf32>
    %c2_64 = arith.constant 2 : index
    %c1_65 = arith.constant 1 : index
    %c0_66 = arith.constant 0 : index
    %c0_67 = arith.constant 0 : index
    %53 = vector.load %arg2[%c2_64, %c1_65, %c0_66, %c0_67] : memref<3x3x68x32xf32, #tpu.memory_space<vmem>>, vector<1x1x68x32xf32>
    %54 = vector.shape_cast %53 : vector<1x1x68x32xf32> to vector<68x32xf32>
    %cst_68 = arith.constant dense<0.000000e+00> : vector<256x32xf32>
    %55 = tpu.matmul %52, %54, %cst_68 {dimension_numbers = #tpu.dot_dimension_numbers<[1], [0], [0], [1], [0, 0, 1, 1], [], []>} : vector<256x68xf32>, vector<68x32xf32>, vector<256x32xf32> -> vector<256x32xf32>
    %56 = arith.addf %49, %55 : vector<256x32xf32>
    %c0_69 = arith.constant 0 : index
    %c2_70 = arith.constant 2 : index
    %c2_71 = arith.constant 2 : index
    %c0_72 = arith.constant 0 : index
    %57 = vector.load %arg1[%c0_69, %c2_70, %c2_71, %c0_72] : memref<1x18x18x68xf32, #tpu.memory_space<vmem>>, vector<1x16x16x68xf32>
    %58 = vector.shape_cast %57 : vector<1x16x16x68xf32> to vector<16x16x68xf32>
    %59 = vector.shape_cast %58 : vector<16x16x68xf32> to vector<256x68xf32>
    %c2_73 = arith.constant 2 : index
    %c2_74 = arith.constant 2 : index
    %c0_75 = arith.constant 0 : index
    %c0_76 = arith.constant 0 : index
    %60 = vector.load %arg2[%c2_73, %c2_74, %c0_75, %c0_76] : memref<3x3x68x32xf32, #tpu.memory_space<vmem>>, vector<1x1x68x32xf32>
    %61 = vector.shape_cast %60 : vector<1x1x68x32xf32> to vector<68x32xf32>
    %cst_77 = arith.constant dense<0.000000e+00> : vector<256x32xf32>
    %62 = tpu.matmul %59, %61, %cst_77 {dimension_numbers = #tpu.dot_dimension_numbers<[1], [0], [0], [1], [0, 0, 1, 1], [], []>} : vector<256x68xf32>, vector<68x32xf32>, vector<256x32xf32> -> vector<256x32xf32>
    %63 = arith.addf %56, %62 : vector<256x32xf32>
    %c0_78 = arith.constant 0 : index
    %c0_79 = arith.constant 0 : index
    %64 = vector.load %arg3[%c0_78, %c0_79] : memref<1x32xf32, #tpu.memory_space<vmem>>, vector<1x32xf32>
    %65 = vector.broadcast %64 : vector<1x32xf32> to vector<256x32xf32>
    %66 = arith.addf %63, %65 : vector<256x32xf32>
    %cst_80 = arith.constant 0.000000e+00 : f32
    %67 = vector.broadcast %cst_80 : f32 to vector<256x32xf32>
    %68 = arith.maximumf %66, %67 : vector<256x32xf32>
    %69 = tpu.transpose %68, [1, 0] : vector<256x32xf32> -> vector<32x256xf32>
    %c0_81 = arith.constant 0 : index
    %c0_82 = arith.constant 0 : index
    %c0_83 = arith.constant 0 : index
    %70 = vector.load %arg4[%c0_81, %c0_82, %c0_83] : memref<1x32x256xf32, #tpu.memory_space<vmem>>, vector<1x32x256xf32>
    %71 = vector.shape_cast %70 : vector<1x32x256xf32> to vector<32x256xf32>
    %72 = vector.shape_cast %69 : vector<32x256xf32> to vector<1x32x256xf32>
    tpu.vector_store %arg4[%c0_81, %c0_82, %c0_83], %72 {strides = array<i32>} : memref<1x32x256xf32, #tpu.memory_space<vmem>>, vector<1x32x256xf32>,
    return
  }
  func.func @transform_0(%arg0: i32) -> (i32, i32, i32, i32) {
    %c0_i32 = arith.constant 0 : i32
    %c0_i32_0 = arith.constant 0 : i32
    %c0_i32_1 = arith.constant 0 : i32
    %c0_i32_2 = arith.constant 0 : i32
    return %arg0, %c0_i32, %c0_i32_0, %c0_i32_1 : i32, i32, i32, i32
  }
  func.func @transform_1(%arg0: i32) -> (i32, i32, i32, i32) {
    %c0_i32 = arith.constant 0 : i32
    %c0_i32_0 = arith.constant 0 : i32
    %c0_i32_1 = arith.constant 0 : i32
    %c0_i32_2 = arith.constant 0 : i32
    %c0_i32_3 = arith.constant 0 : i32
    return %c0_i32, %c0_i32_0, %c0_i32_1, %c0_i32_2 : i32, i32, i32, i32
  }
  func.func @transform_2(%arg0: i32) -> (i32, i32) {
    %c0_i32 = arith.constant 0 : i32
    %c0_i32_0 = arith.constant 0 : i32
    %c0_i32_1 = arith.constant 0 : i32
    return %c0_i32, %c0_i32_0 : i32, i32
  }
  func.func @transform_3(%arg0: i32) -> (i32, i32, i32) {
    %c0_i32 = arith.constant 0 : i32
    %c0_i32_0 = arith.constant 0 : i32
    %c0_i32_1 = arith.constant 0 : i32
    return %arg0, %c0_i32, %c0_i32_0 : i32, i32, i32
  }
}

</mosaic_0001>

<bundles_post_ra>
// kernel: tpu_custom_call.1
= control target key start
LH: loop header
LB: loop body
LE: loop exit
PB: predicated region body
PF: predicated region fallthrough
CT: control target
= control target key end

     0   :  { %8 = vsyncpa [#allocation3], 0  ;;  %s5026_s0 = inlined_call_operand.vmem [shape: f32[2,18,18,68], index: 0, kind: input, shape index: {}]   ;;  %s5027_s1 = inlined_call_operand.vmem [shape: f32[3,3,68,32], index: 1, kind: input, shape index: {}]   ;;  %s5028_s2 = inlined_call_operand.vmem [shape: f32[1,32], index: 2, kind: input, shape index: {}]   ;;  %s5029_s3 = inlined_call_operand.hbm [shape: f32[2,32,256], index: 3, kind: output, shape index: {}]  }
   0x1   :  { %10 = vsyncpa [#allocation3 + $0x1], 0  ;;  %s3629_s12 = smov 0   ;;  %s3631_s13 = smov 0  }
   0x2   :  { %s3633_s14 = smov 0   ;;  %s3635_s15 = smov 0  }
   0x3 LB: > { %s3650_s16 = sadd.s32 4294967295, %s3605_s15   ;;  %s2900_s17 = sadd.s32 4294967294, %s3605_s15   ;;  %s3605_s15 = sphi %s3635_s15, %s5135_s15   ;;  %s3601_s14 = sphi %s3633_s14, %s5134_s14   ;;  %s3597_s13 = sphi %s3631_s13, %s5133_s13   ;;  %s3593_s12 = sphi %s3629_s12, %s5132_s12  }
   0x4   : > { %s3654_s18 = sadd.s32 1, %s3605_s15   ;;  %s91_s19 = sadd.s32 1, %s3601_s14 }
   0x5   : > { %s88_s20 = ssub.s32 %s3605_s15, %s3654_s18  ;;  %p101_p0 = scmp.ne.s32.totalorder %s3601_s14, %s3597_s13 }
   0x6   : > { %p89_p1 = scmp.eq.s32.totalorder %s88_s20, 0  ;;  %p102_p2 = scmp.eq.s32.totalorder %s3650_s16, 1 }
   0x7   : > { %p107_p3 = scmp.ne.s32.totalorder %s3597_s13, %s3593_s12  ;;  %p108_p4 = scmp.eq.s32.totalorder %s2900_s17, 1 }
   0x8   : > { %s3665_s21 = scalar_select %p89_p1, %s3601_s14, %s91_s19  }
   0x9   : > { %p3667_p5 = por %p102_p2, %p101_p0  ;;  %p3671_p6 = por %p108_p4, %p107_p3 }
   0xa   : > { %p2903_p7 = scmp.ge.s32.totalorder %s3605_s15, 1  ;;  %p140_p8 = scmp.lt.s32.totalorder %s3605_s15, 3 }
   0xc   : > { %p141_p9 = pnand %p2903_p7, %p140_p8 }
   0xe   : > { %144 = sbr.rel (%p141_p9) target bundleno = 820 (0x334), region = 32 }
  0x13   : > { %v2914_v0 = vld [vmem:[%s5027_s1 + $0x88] sm:$0xf]  ;;  %vm349_vm0 = vcmask 1043456   ;;  %v2913_v1 = vld [vmem:[%s5027_s1 + $0x80] sm:$0xff]  ;;  %p164_p10 = scmp.lt.s32.totalorder %s3650_s16, 1  ;;  %v2912_v2 = vld [vmem:[%s5027_s1 + $0x78] sm:$0xff] }
  0x14   : > { %3473 = vmatpush.msk.msra.mxu1 %vm349_vm0, %v2914_v0  ;;  %3474 = vmatpush.msk.msra.mxu2 %vm349_vm0, %v2914_v0  ;;  %v2911_v3 = vld [vmem:[%s5027_s1 + $0x70] sm:$0xff]  ;;  %v2910_v4 = vld [vmem:[%s5027_s1 + $0x68] sm:$0xff]  ;;  %v2909_v5 = vld [vmem:[%s5027_s1 + $0x60] sm:$0xff]  ;;  %vm252_vm1 = vcmask 556032   ;;  %s3472_s20 = sshll.u32 %s3650_s16, 6  ;;  %s3563_s7 = scalar_lea.hbm %s5029_s3, 128 }
  0x15   : > { %3475 = vmatpush.msk.msra.mxu3 %vm349_vm0, %v2914_v0  ;;  %2915 = vmatpush.msk.msra.mxu0 %vm349_vm0, %v2914_v0  ;;  %s165_s5 = scalar_select %p164_p10, %s3650_s16, 1  ;;  %v2908_v6 = vld [vmem:[%s5027_s1 + $0x58] sm:$0xff]  ;;  %v2907_v7 = vld [vmem:[%s5027_s1 + $0x50] sm:$0xff]  ;;  %v2906_v8 = vld [vmem:[%s5027_s1 + $0x48] sm:$0xff] }
  0x16   : > { %3476 = vmatpush.msra.mxu1 %v2913_v1  ;;  %3477 = vmatpush.msra.mxu2 %v2913_v1  ;;  %v2989_v11 = vld [vmem:[%s5027_s1 + $0xd0] sm:$0xf]  ;;  %v209_v13 = vld [vmem:[%s5027_s1 + $0x40] sm:$0xf]  ;;  %v3063_v14 = vld [vmem:[%s5027_s1 + $0x118] sm:$0xf]  ;;  %s2834_s27 = scalar_lea.hbm %s5029_s3, %s3472_s20 }
  0x17   : > { %3478 = vmatpush.msra.mxu3 %v2913_v1  ;;  %361 = vmatpush.msra.mxu0 %v2913_v1  ;;  %s3500_s10 = smul.u32 432, %s165_s5  ;;  %v2988_v15 = vld [vmem:[%s5027_s1 + $0xc8] sm:$0xff]  ;;  %v208_v16 = vld [vmem:[%s5027_s1 + $0x38] sm:$0xff]  ;;  %v3062_v18 = vld [vmem:[%s5027_s1 + $0x110] sm:$0xff]  ;;  %s2837_s29 = sshll.u32 %s2834_s27, 4  ;;  %s2838_s29 = int_to_ptr.hbm [resolvable:$true] %s2837_s29 }
  0x18   : > { %3479 = vmatpush.msra.mxu1 %v2912_v2  ;;  %3480 = vmatpush.msra.mxu2 %v2912_v2  ;;  %v3137_v19 = vld [vmem:[%s5027_s1 + $0x160] sm:$0xf]  ;;  %v3061_v21 = vld [vmem:[%s5027_s1 + $0x108] sm:$0xff]  ;;  %v207_v22 = vld [vmem:[%s5027_s1 + $0x30] sm:$0xff]  ;;  %s3557_s4 = sshra.s32 %s2838_s29, 4  ;;  %s3558_s4 = int_to_ptr.hbm [resolvable:$true] %s3557_s4 }
  0x19   : > { %3481 = vmatpush.msra.mxu3 %v2912_v2  ;;  %362 = vmatpush.msra.mxu0 %v2912_v2  ;;  %s3710_s26 = scalar_lea.vmem %s5026_s0, %s3500_s10  ;;  %v2987_v20 = vld [vmem:[%s5027_s1 + $0xc0] sm:$0xff]  ;;  %v3136_v25 = vld [vmem:[%s5027_s1 + $0x158] sm:$0xff]  ;;  %v206_v28 = vld [vmem:[%s5027_s1 + $0x28] sm:$0xff]  ;;  %s3559_s5 = scalar_lea.hbm %s3558_s4, 64 }
  0x1a   : > { %3482 = vmatpush.msra.mxu1 %v2911_v3  ;;  %3483 = vmatpush.msra.mxu2 %v2911_v3  ;;  %v3716_v9 = vld [vmem:[%s3710_s26 + $0x61] sm:$0xff]  ;;  %v3765_v23 = vld [vmem:[%s3710_s26 + $0x69] sm:$0xff]  ;;  %v2986_v26 = vld [vmem:[%s5027_s1 + $0xb8] sm:$0xff]  ;;  %p3560_p11 = scmp.ne.s32.totalorder %s3558_s4, %s3559_s5  ;;  %p3564_p0 = scmp.lt.s32.totalorder %s3558_s4, %s5029_s3 }
  0x1b   : > { %3484 = vmatpush.msra.mxu3 %v2911_v3  ;;  %363 = vmatpush.msra.mxu0 %v2911_v3  ;;  %v3719_v10 = vld [vmem:[%s3710_s26 + $0xc1] sm:$0xff]  ;;  %v3768_v24 = vld [vmem:[%s3710_s26 + $0xc9] sm:$0xff]  ;;  %v3059_v34 = vld [vmem:[%s5027_s1 + $0xf8] sm:$0xff]  ;;  %p3565_p1 = scmp.lt.s32.totalorder %s3563_s7, %s3559_s5 }
  0x1c   : > { %3485 = vmatpush.msra.mxu1 %v2910_v4  ;;  %3486 = vmatpush.msra.mxu2 %v2910_v4  ;;  %v3725_v12 = vld [vmem:[%s3710_s26 + $0x121] sm:$0xff]  ;;  %v3779_v27 = vld [vmem:[%s3710_s26 + $0x129] sm:$0xff]  ;;  %v204_v38 = vld [vmem:[%s5027_s1 + $0x18] sm:$0xff]  ;;  %p3561_p12 = pnand %p3560_p11, %p3667_p5 }
  0x1d   : > { %3487 = vmatpush.msra.mxu3 %v2910_v4  ;;  %364 = vmatpush.msra.mxu0 %v2910_v4  ;;  %v210_v17 = vld [vmem:[%s3710_s26 + $0x1] sm:$0xff]  ;;  %v3135_v30 = vld [vmem:[%s5027_s1 + $0x150] sm:$0xff]  ;;  %v3819_v39 = vld [vmem:[%s3710_s26 + $0x79] sm:$0xff]  ;;  %p3566_p2 = por %p3565_p1, %p3564_p0 }
  0x1e   : > { %3488 = vmatpush.msra.mxu1 %v2909_v5  ;;  %3489 = vmatpush.msra.mxu2 %v2909_v5  ;;  %v3060_v29 = vld [vmem:[%s5027_s1 + $0x100] sm:$0xff]  ;;  %v2985_v31 = vld [vmem:[%s5027_s1 + $0xb0] sm:$0xff]  ;;  %v3134_v35 = vld [vmem:[%s5027_s1 + $0x148] sm:$0xff]  ;;  %p3562_p13 = pneg %p3561_p12 }
  0x1f   : > { %3490 = vmatpush.msra.mxu3 %v2909_v5  ;;  %365 = vmatpush.msra.mxu0 %v2909_v5  ;;  %v205_v32 = vld [vmem:[%s5027_s1 + $0x20] sm:$0xff]  ;;  %v211_v33 = vld [vmem:[%s3710_s26 + $0x9] sm:$0xff]  ;;  %v3132_v46 = vld [vmem:[%s5027_s1 + $0x138] sm:$0xff] }
  0x20   : > { %3491 = vmatpush.msra.mxu1 %v2908_v6  ;;  %3492 = vmatpush.msra.mxu2 %v2908_v6  ;;  %v2984_v36 = vld [vmem:[%s5027_s1 + $0xa8] sm:$0xff]  ;;  %v3058_v37 = vld [vmem:[%s5027_s1 + $0xf0] sm:$0xff]  ;;  %v3822_v40 = vld [vmem:[%s3710_s26 + $0xd9] sm:$0xff]  ;;  %p3567_p3 = pnand %p3566_p2, %p3562_p13 }
  0x21   : > { %3493 = vmatpush.msra.mxu3 %v2908_v6  ;;  %366 = vmatpush.msra.mxu0 %v2908_v6  ;;  %v3133_v41 = vld [vmem:[%s5027_s1 + $0x140] sm:$0xff]  ;;  %v203_v44 = vld [vmem:[%s5027_s1 + $0x10] sm:$0xff]  ;;  %v3057_v45 = vld [vmem:[%s5027_s1 + $0xe8] sm:$0xff] }
  0x22   : > { %3494 = vmatpush.msra.mxu1 %v2907_v7  ;;  %3495 = vmatpush.msra.mxu2 %v2907_v7  ;;  %v2983_v42 = vld [vmem:[%s5027_s1 + $0xa0] sm:$0xff]  ;;  %v2982_v48 = vld [vmem:[%s5027_s1 + $0x98] sm:$0xff]  ;;  %v3131_v50 = vld [vmem:[%s5027_s1 + $0x130] sm:$0xff] }
  0x23   : > { %3496 = vmatpush.msra.mxu3 %v2907_v7  ;;  %367 = vmatpush.msra.mxu0 %v2907_v7  ;;  %v3832_v43 = vld [vmem:[%s3710_s26 + $0x139] sm:$0xff]  ;;  %v202_v51 = vld [vmem:[%s5027_s1 + $0x8] sm:$0xff]  ;;  %v2981_v55 = vld [vmem:[%s5027_s1 + $0x90] sm:$0xff] }
  0x24   : > { %3497 = vmatpush.msra.mxu1 %v2906_v8  ;;  %3498 = vmatpush.msra.mxu2 %v2906_v8  ;;  %v3850_v47 = vld [vmem:[%s3710_s26 + $0x19] sm:$0xff]  ;;  %v3865_v52 = vld [vmem:[%s3710_s26 + $0x81] sm:$0xff]  ;;  %v3897_v60 = vld [vmem:[%s3710_s26 + $0x91] sm:$0xff] }
  0x25   : > { %2924 = vmatmul.msk.f32.vlgmr.msra.gmra.mxu1 %vm252_vm1, %v3716_v9  ;;  %2932 = vmatmul.msk.f32.vlgmr.msra.gmra.mxu2 %vm252_vm1, %v3719_v10  ;;  %v3056_v49 = vld [vmem:[%s5027_s1 + $0xe0] sm:$0xff]  ;;  %v3055_v57 = vld [vmem:[%s5027_s1 + $0xd8] sm:$0xff]  ;;  %v3130_v58 = vld [vmem:[%s5027_s1 + $0x128] sm:$0xff] }
  0x26   : > { %2990 = vmatpush.msk.msrb.mxu2 %vm349_vm0, %v2989_v11  ;;  %3499 = vmatpush.msra.mxu3 %v2906_v8  ;;  %v3868_v53 = vld [vmem:[%s3710_s26 + $0xe1] sm:$0xff]  ;;  %v3900_v61 = vld [vmem:[%s3710_s26 + $0xf1] sm:$0xff]  ;;  %v3932_v4 = vld [vmem:[%s3710_s26 + $0x99] sm:$0xff] }
  0x27   : > { %2940 = vmatmul.msk.f32.vlgmr.msra.gmra.mxu3 %vm252_vm1, %v3725_v12  ;;  %2948 = vmatpush.msk.msrb.mxu1 %vm349_vm0, %v209_v13  ;;  %v3873_v54 = vld [vmem:[%s3710_s26 + $0x141] sm:$0xff]  ;;  %v3905_v62 = vld [vmem:[%s3710_s26 + $0x151] sm:$0xff]  ;;  %v3935_v5 = vld [vmem:[%s3710_s26 + $0xf9] sm:$0xff] }
  0x28   : > { %3064 = vmatpush.msk.msrb.mxu3 %vm349_vm0, %v3063_v14  ;;  %827 = vmatpush.msrb.mxu2 %v2988_v15  ;;  %v3883_v56 = vld [vmem:[%s3710_s26 + $0x21] sm:$0xff]  ;;  %v3285_v63 = vld [vmem:[%s5027_s1 + $0x1f0] sm:$0xf]  ;;  %v3359_v1 = vld [vmem:[%s5027_s1 + $0x238] sm:$0xf] }
  0x29   : > { %368 = vmatpush.msra.mxu0 %v2906_v8  ;;  %573 = vmatpush.msrb.mxu1 %v208_v16  ;;  %v201_v59 = vld [vmem:[%s5027_s1] sm:$0xff]  ;;  %v3915_v0 = vld [vmem:[%s3710_s26 + $0x31] sm:$0xff]  ;;  %v3211_v3 = vld [vmem:[%s5027_s1 + $0x1a8] sm:$0xf] }
  0x2a   : > { %2916 = vmatmul.msk.f32.vlgmr.msra.gmra.mxu0 %vm252_vm1, %v210_v17  ;;  %1114 = vmatpush.msrb.mxu3 %v3062_v18  ;;  %v3129_v2 = vld [vmem:[%s5027_s1 + $0x120] sm:$0xff]  ;;  %v3954_v11 = vld [vmem:[%s3710_s26 + $0xa9] sm:$0xff]  ;;  %v3971_v16 = vld [vmem:[%s3710_s26 + $0xb1] sm:$0xff] }
  0x2b   : > { %3138 = vmatpush.msk.msrb.mxu0 %vm349_vm0, %v3137_v19  ;;  %828 = vmatpush.msrb.mxu2 %v2987_v20  ;;  %v3940_v6 = vld [vmem:[%s3710_s26 + $0x159] sm:$0xff]  ;;  %v3957_v13 = vld [vmem:[%s3710_s26 + $0x109] sm:$0xff]  ;;  %v3974_v17 = vld [vmem:[%s3710_s26 + $0x111] sm:$0xff] }
  0x2c   : > { %1115 = vmatpush.msrb.mxu3 %v3061_v21  ;;  %574 = vmatpush.msrb.mxu1 %v207_v22  ;;  %v215_v7 = vld [vmem:[%s3710_s26 + $0x39] sm:$0xff]  ;;  %v3961_v14 = vld [vmem:[%s3710_s26 + $0x169] sm:$0xff]  ;;  %v3978_v18 = vld [vmem:[%s3710_s26 + $0x171] sm:$0xff] }
  0x2d   : > { %2925 = vmatmul.msk.f32.gmra.mxu1 %vm252_vm1, %v3765_v23  ;;  %2933 = vmatmul.msk.f32.gmra.mxu2 %vm252_vm1, %v3768_v24  ;;  %v3433_v8 = vld [vmem:[%s5027_s1 + $0x280] sm:$0xf]  ;;  %v216_v15 = vld [vmem:[%s3710_s26 + $0x49] sm:$0xff]  ;;  %v217_v19 = vld [vmem:[%s3710_s26 + $0x51] sm:$0xff] }
  0x2e   : > { %1400 = vmatpush.msrb.mxu0 %v3136_v25  ;;  %829 = vmatpush.msrb.mxu2 %v2986_v26  ;;  %v3284_v20 = vld [vmem:[%s5027_s1 + $0x1e8] sm:$0xff]  ;;  %v3358_v21 = vld [vmem:[%s5027_s1 + $0x230] sm:$0xff]  ;;  %v169_v22 = vld [vmem:[%s3710_s26] sm:$0xff] }
  0x2f   : > { %2941 = vmatmul.msk.f32.gmra.mxu3 %vm252_vm1, %v3779_v27  ;;  %575 = vmatpush.msrb.mxu1 %v206_v28  ;;  %v678_v25 = vld [vmem:[%s3710_s26 + $0x2] sm:$0xff]  ;;  %v3023_v26 = vld [vmem:[%s3710_s26 + $0x18] sm:$0xff] }
  0x30   : > { %1116 = vmatpush.msrb.mxu3 %v3060_v29  ;;  %1401 = vmatpush.msrb.mxu0 %v3135_v30  ;;  %v3210_v28 = vld [vmem:[%s5027_s1 + $0x1a0] sm:$0xff]  ;;  %v3432_v29 = vld [vmem:[%s5027_s1 + $0x278] sm:$0xff]  ;;  %v170_v30 = vld [vmem:[%s3710_s26 + $0x8] sm:$0xff] }
  0x31   : > { %830 = vmatpush.msrb.mxu2 %v2985_v31  ;;  %576 = vmatpush.msrb.mxu1 %v205_v32  ;;  %v679_v31 = vld [vmem:[%s3710_s26 + $0xa] sm:$0xff]  ;;  %v3024_v32 = vld [vmem:[%s3710_s26 + $0x20] sm:$0xff] }
  0x32   : > { %2917 = vmatmul.msk.f32.gmra.mxu0 %vm252_vm1, %v211_v33  ;;  %1117 = vmatpush.msrb.mxu3 %v3059_v34  ;;  %v4015_v33 = vld [vmem:[%s3710_s26 + $0x1a] sm:$0xff]  ;;  %v4020_v34 = vld [vmem:[%s3710_s26 + $0x30] sm:$0xff] }
  0x33   : > { %1402 = vmatpush.msrb.mxu0 %v3134_v35  ;;  %831 = vmatpush.msrb.mxu2 %v2984_v36  ;;  %v4028_v35 = vld [vmem:[%s3710_s26 + $0x22] sm:$0xff]  ;;  %v4033_v36 = vld [vmem:[%s3710_s26 + $0x38] sm:$0xff] }
  0x34   : > { %1118 = vmatpush.msrb.mxu3 %v3058_v37  ;;  %577 = vmatpush.msrb.mxu1 %v204_v38  ;;  %v3283_v37 = vld [vmem:[%s5027_s1 + $0x1e0] sm:$0xff]  ;;  %v3357_v38 = vld [vmem:[%s5027_s1 + $0x228] sm:$0xff] }
  0x35   : > { %2926 = vmatmul.msk.f32.gmra.mxu1 %vm252_vm1, %v3819_v39  ;;  %2934 = vmatmul.msk.f32.gmra.mxu2 %vm252_vm1, %v3822_v40 }
  0x36   : > { %1403 = vmatpush.msrb.mxu0 %v3133_v41  ;;  %832 = vmatpush.msrb.mxu2 %v2983_v42  ;;  %v4047_v41 = vld [vmem:[%s3710_s26 + $0x32] sm:$0xff] }
  0x37   : > { %2942 = vmatmul.msk.f32.gmra.mxu3 %vm252_vm1, %v3832_v43  ;;  %578 = vmatpush.msrb.mxu1 %v203_v44  ;;  %v3209_v42 = vld [vmem:[%s5027_s1 + $0x198] sm:$0xff]  ;;  %v4054_v44 = vld [vmem:[%s3710_s26 + $0x48] sm:$0xff] }
  0x38   : > { %1119 = vmatpush.msrb.mxu3 %v3057_v45  ;;  %1404 = vmatpush.msrb.mxu0 %v3132_v46  ;;  %v3431_v45 = vld [vmem:[%s5027_s1 + $0x270] sm:$0xff]  ;;  %v4066_v46 = vld [vmem:[%s3710_s26 + $0x3a] sm:$0xff] }
  0x39   : > { %833 = vmatpush.msrb.mxu2 %v2982_v48  ;;  %579 = vmatpush.msrb.mxu1 %v202_v51  ;;  %v4079_v48 = vld [vmem:[%s3710_s26 + $0x4a] sm:$0xff]  ;;  %v3282_v51 = vld [vmem:[%s5027_s1 + $0x1d8] sm:$0xff] }
  0x3a   : > { %2918 = vmatmul.msk.f32.gmra.mxu0 %vm252_vm1, %v3850_v47  ;;  %1120 = vmatpush.msrb.mxu3 %v3056_v49  ;;  %v4083_v49 = vld [vmem:[%s3710_s26 + $0x60] sm:$0xff] }
  0x3b   : > { %1405 = vmatpush.msrb.mxu0 %v3131_v50  ;;  %834 = vmatpush.msrb.mxu2 %v2981_v55  ;;  %v4092_v50 = vld [vmem:[%s3710_s26 + $0x52] sm:$0xff]  ;;  %v4100_v55 = vld [vmem:[%s3710_s26 + $0x68] sm:$0xff] }
  0x3c   : > { %1121 = vmatpush.msrb.mxu3 %v3055_v57  ;;  %580 = vmatpush.msrb.mxu1 %v201_v59  ;;  %v4122_v59 = vld [vmem:[%s3710_s26 + $0x78] sm:$0xff] }
  0x3d   : > { %2927 = vmatmul.msk.f32.gmra.mxu1 %vm252_vm1, %v3865_v52  ;;  %2935 = vmatmul.msk.f32.gmra.mxu2 %vm252_vm1, %v3868_v53 }
  0x3e   : > { %1406 = vmatpush.msrb.mxu0 %v3130_v58  ;;  %3286 = vmatpush.msk.msra.mxu2 %vm349_vm0, %v3285_v63  ;;  %v4117_v58 = vld [vmem:[%s3710_s26 + $0x62] sm:$0xff] }
  0x3f   : > { %2943 = vmatmul.msk.f32.gmra.mxu3 %vm252_vm1, %v3873_v54  ;;  %3212 = vmatpush.msk.msra.mxu1 %vm349_vm0, %v3211_v3  ;;  %v3430_v63 = vld [vmem:[%s5027_s1 + $0x268] sm:$0xff] }
  0x40   : > { %3360 = vmatpush.msk.msra.mxu3 %vm349_vm0, %v3359_v1  ;;  %1407 = vmatpush.msrb.mxu0 %v3129_v2  ;;  %v4142_v3 = vld [vmem:[%s3710_s26 + $0x6a] sm:$0xff] }
  0x41   : > { %1973 = vmatpush.msra.mxu2 %v3284_v20  ;;  %1686 = vmatpush.msra.mxu1 %v3210_v28 }
  0x42   : > { %2919 = vmatmul.msk.f32.gmra.mxu0 %vm252_vm1, %v3883_v56  ;;  %2259 = vmatpush.msra.mxu3 %v3358_v21  ;;  %v4169_v21 = vld [vmem:[%s3710_s26 + $0x90] sm:$0xff] }
  0x43   : > { %3434 = vmatpush.msk.msra.mxu0 %vm349_vm0, %v3433_v8  ;;  %1974 = vmatpush.msra.mxu2 %v3283_v37  ;;  %5058 = vst [vmem:[#allocation9_spill] sm:$0xff] %v4169_v21 }
  0x44   : > { %2260 = vmatpush.msra.mxu3 %v3357_v38  ;;  %1687 = vmatpush.msra.mxu1 %v3209_v42  ;;  %v3429_v38 = vld [vmem:[%s5027_s1 + $0x260] sm:$0xff] }
  0x45   : > { %2928 = vmatmul.msk.f32.gmra.mxu1 %vm252_vm1, %v3897_v60  ;;  %2936 = vmatmul.msk.f32.gmra.mxu2 %vm252_vm1, %v3900_v61 }
  0x46   : > { %2545 = vmatpush.msra.mxu0 %v3432_v29  ;;  %1975 = vmatpush.msra.mxu2 %v3282_v51  ;;  %v4220_v51 = vld [vmem:[%s3710_s26 + $0x92] sm:$0xff] }
  0x47   : > { %2944 = vmatmul.msk.f32.gmra.mxu3 %vm252_vm1, %v3905_v62  ;;  %5063 = vst [vmem:[#allocation14_spill] sm:$0xff] %v4220_v51 }
  0x48   : > { %2546 = vmatpush.msra.mxu0 %v3431_v45 }
  0x4a   : > { %2920 = vmatmul.msk.f32.gmra.mxu0 %vm252_vm1, %v3915_v0 }
  0x4b   : > { %2547 = vmatpush.msra.mxu0 %v3430_v63 }
  0x4d   : > { %2929 = vmatmul.msk.f32.gmra.mxu1 %vm252_vm1, %v3932_v4  ;;  %2937 = vmatmul.msk.f32.gmra.mxu2 %vm252_vm1, %v3935_v5 }
  0x4e   : > { %2548 = vmatpush.msra.mxu0 %v3429_v38 }
  0x4f   : > { %2945 = vmatmul.msk.f32.gmra.mxu3 %vm252_vm1, %v3940_v6 }
  0x52   : > { %2921 = vmatmul.msk.f32.gmra.mxu0 %vm252_vm1, %v215_v7 }
  0x55   : > { %2930 = vmatmul.msk.f32.gmra.mxu1 %vm252_vm1, %v3954_v11  ;;  %2938 = vmatmul.msk.f32.gmra.mxu2 %vm252_vm1, %v3957_v13 }
  0x57   : > { %2946 = vmatmul.msk.f32.gmra.mxu3 %vm252_vm1, %v3961_v14 }
  0x5a   : > { %2922 = vmatmul.msk.f32.gmra.mxu0 %vm252_vm1, %v216_v15 }
  0x5d   : > { %2931 = vmatmul.msk.f32.gmra.mxu1 %vm252_vm1, %v3971_v16  ;;  %2939 = vmatmul.msk.f32.gmra.mxu2 %vm252_vm1, %v3974_v17 }
  0x5f   : > { %2947 = vmatmul.msk.f32.gmra.mxu3 %vm252_vm1, %v3978_v18 }
  0x62   : > { %2923 = vmatmul.msk.f32.gmra.mxu0 %vm252_vm1, %v217_v19 }
  0x65   : > { %2949 = vmatmul.msk.f32.vlgmr.msrb.gmra.mxu1 %vm252_vm1, %v169_v22  ;;  %2991 = vmatmul.msk.f32.vlgmr.msrb.gmra.mxu2 %vm252_vm1, %v678_v25  ;;  %v3281_v25 = vld [vmem:[%s5027_s1 + $0x1d0] sm:$0xff] }
  0x66   : > { %1976 = vmatpush.msra.mxu2 %v3281_v25 }
  0x67   : > { %3065 = vmatmul.msk.f32.vlgmr.msrb.gmra.mxu3 %vm252_vm1, %v3023_v26 }
  0x6a   : > { %3139 = vmatmul.msk.f32.vlgmr.msrb.gmra.mxu0 %vm252_vm1, %v3850_v47  ;;  %v4070_v47 = vld [vmem:[%s3710_s26 + $0x50] sm:$0xff] }
  0x6d   : > { %2950 = vmatmul.msk.f32.gmra.mxu1 %vm252_vm1, %v170_v30  ;;  %2992 = vmatmul.msk.f32.gmra.mxu2 %vm252_vm1, %v679_v31  ;;  %v4192_v30 = vld [vmem:[%s3710_s26 + $0x82] sm:$0xff] }
  0x6e   : > { %5060 = vst [vmem:[#allocation11_spill] sm:$0xff] %v4192_v30  ;;  %v3207_v31 = vld [vmem:[%s5027_s1 + $0x188] sm:$0xff] }
  0x6f   : > { %3066 = vmatmul.msk.f32.gmra.mxu3 %vm252_vm1, %v3024_v32 }
  0x72   : > { %3140 = vmatmul.msk.f32.gmra.mxu0 %vm252_vm1, %v3883_v56  ;;  %v3356_v56 = vld [vmem:[%s5027_s1 + $0x220] sm:$0xff] }
  0x73   : > { %2261 = vmatpush.msra.mxu3 %v3356_v56  ;;  %v4225_v56 = vld [vmem:[%s3710_s26 + $0xa8] sm:$0xff] }
  0x74   : > { %5064 = vst [vmem:[#allocation15_spill] sm:$0xff] %v4225_v56 }
  0x75   : > { %2951 = vmatmul.msk.f32.gmra.mxu1 %vm252_vm1, %v3023_v26  ;;  %2993 = vmatmul.msk.f32.gmra.mxu2 %vm252_vm1, %v4015_v33 }
  0x77   : > { %3067 = vmatmul.msk.f32.gmra.mxu3 %vm252_vm1, %v4020_v34 }
  0x7a   : > { %3141 = vmatmul.msk.f32.gmra.mxu0 %vm252_vm1, %v3915_v0 }
  0x7d   : > { %2952 = vmatmul.msk.f32.gmra.mxu1 %vm252_vm1, %v3024_v32  ;;  %2994 = vmatmul.msk.f32.gmra.mxu2 %vm252_vm1, %v4028_v35  ;;  %v4200_v32 = vld [vmem:[%s3710_s26 + $0x98] sm:$0xff] }
  0x7e   : > { %5061 = vst [vmem:[#allocation12_spill] sm:$0xff] %v4200_v32 }
  0x7f   : > { %3068 = vmatmul.msk.f32.gmra.mxu3 %vm252_vm1, %v4033_v36 }
  0x82   : > { %3142 = vmatmul.msk.f32.gmra.mxu0 %vm252_vm1, %v215_v7  ;;  %v4147_v7 = vld [vmem:[%s3710_s26 + $0x80] sm:$0xff] }
  0x83   : > { %5055 = vst [vmem:[#allocation6_spill] sm:$0xff] %v4147_v7 }
  0x85   : > { %2953 = vmatmul.msk.f32.gmra.mxu1 %vm252_vm1, %v4020_v34  ;;  %2995 = vmatmul.msk.f32.gmra.mxu2 %vm252_vm1, %v4047_v41 }
  0x87   : > { %3069 = vmatmul.msk.f32.gmra.mxu3 %vm252_vm1, %v4054_v44 }
  0x8a   : > { %3143 = vmatmul.msk.f32.gmra.mxu0 %vm252_vm1, %v216_v15 }
  0x8d   : > { %2954 = vmatmul.msk.f32.gmra.mxu1 %vm252_vm1, %v4033_v36  ;;  %2996 = vmatmul.msk.f32.gmra.mxu2 %vm252_vm1, %v4066_v46 }
  0x8f   : > { %3070 = vmatmul.msk.f32.gmra.mxu3 %vm252_vm1, %v4070_v47 }
  0x92   : > { %3144 = vmatmul.msk.f32.gmra.mxu0 %vm252_vm1, %v217_v19 }
  0x95   : > { %2955 = vmatmul.msk.f32.gmra.mxu1 %vm252_vm1, %v4054_v44  ;;  %2997 = vmatmul.msk.f32.gmra.mxu2 %vm252_vm1, %v4079_v48 }
  0x97   : > { %3071 = vmatmul.msk.f32.gmra.mxu3 %vm252_vm1, %v4083_v49 }
  0x9a   : > { %3145 = vmatmul.msk.f32.gmra.mxu0 %vm252_vm1, %v3716_v9  ;;  %v3208_v9 = vld [vmem:[%s5027_s1 + $0x190] sm:$0xff] }
  0x9b   : > { %1688 = vmatpush.msra.mxu1 %v3208_v9 }
  0x9d   : > { %2956 = vmatmul.msk.f32.gmra.mxu1 %vm252_vm1, %v4070_v47  ;;  %2998 = vmatmul.msk.f32.gmra.mxu2 %vm252_vm1, %v4092_v50 }
  0x9e   : > { %1689 = vmatpush.msra.mxu1 %v3207_v31  ;;  %v4247_v31 = vld [vmem:[%s3710_s26 + $0xb0] sm:$0xff] }
  0x9f   : > { %3072 = vmatmul.msk.f32.gmra.mxu3 %vm252_vm1, %v4100_v55  ;;  %5067 = vst [vmem:[#allocation18_spill] sm:$0xff] %v4247_v31 }
  0xa2   : > { %v4114_v57 = vpop.f32.mrf.mxu1  ;;  %3146 = vmatmul.msk.f32.gmra.mxu0 %vm252_vm1, %v3765_v23 }
  0xa5   : > { %2957 = vmatmul.msk.f32.gmra.mxu1 %vm252_vm1, %v4083_v49  ;;  %2999 = vmatmul.msk.f32.gmra.mxu2 %vm252_vm1, %v4117_v58 }
  0xa7   : > { %3073 = vmatmul.msk.f32.gmra.mxu3 %vm252_vm1, %v4122_v59  ;;  %v4133_v0 = vpop.f32.mrf.mxu0 }
  0xa8   : > { %v4135_v23 = vpop.f32.mrf.mxu2 }
  0xaa   : > { %v4137_v1 = vpop.f32.mrf.mxu1  ;;  %v4139_v2 = vpop.f32.mrf.mxu3  ;;  %3147 = vmatmul.msk.f32.gmra.mxu0 %vm252_vm1, %v3819_v39  ;;  %v4164_v39 = vld [vmem:[%s3710_s26 + $0x7a] sm:$0xff] }
  0xab   : > { %5054 = vst [vmem:[#allocation5_spill] sm:$0xff] %v4139_v2  ;;  %v4295_v2 = vld [vmem:[%s3710_s26 + $0xb2] sm:$0xff] }
  0xac   : > { %5057 = vst [vmem:[#allocation8_spill] sm:$0xff] %v4164_v39 }
  0xad   : > { %2958 = vmatmul.msk.f32.gmra.mxu1 %vm252_vm1, %v4100_v55  ;;  %3000 = vmatmul.msk.f32.gmra.mxu2 %vm252_vm1, %v4142_v3  ;;  %5073 = vst [vmem:[#allocation24_spill] sm:$0xff] %v4295_v2 }
  0xaf   : > { %3074 = vmatmul.msk.f32.gmra.mxu3 %vm252_vm1, %v4147_v7  ;;  %v4155_v8 = vpop.f32.mrf.mxu0 }
  0xb0   : > { %v4157_v15 = vpop.f32.mrf.mxu2 }
  0xb2   : > { %v4159_v19 = vpop.f32.mrf.mxu1  ;;  %v4161_v20 = vpop.f32.mrf.mxu3  ;;  %3148 = vmatmul.msk.f32.gmra.mxu0 %vm252_vm1, %v3865_v52  ;;  %v3355_v52 = vld [vmem:[%s5027_s1 + $0x218] sm:$0xff] }
  0xb3   : > { %5056 = vst [vmem:[#allocation7_spill] sm:$0xff] %v4161_v20  ;;  %2262 = vmatpush.msra.mxu3 %v3355_v52  ;;  %v4242_v52 = vld [vmem:[%s3710_s26 + $0x9a] sm:$0xff] }
  0xb4   : > { %5066 = vst [vmem:[#allocation17_spill] sm:$0xff] %v4242_v52  ;;  %v4269_v20 = vld [vmem:[%s3710_s26 + $0xc0] sm:$0xff] }
  0xb5   : > { %2959 = vmatmul.msk.f32.gmra.mxu1 %vm252_vm1, %v4122_v59  ;;  %3001 = vmatmul.msk.f32.gmra.mxu2 %vm252_vm1, %v4164_v39  ;;  %5070 = vst [vmem:[#allocation21_spill] sm:$0xff] %v4269_v20 }
  0xb7   : > { %3075 = vmatmul.msk.f32.gmra.mxu3 %vm252_vm1, %v4169_v21  ;;  %v4177_v22 = vpop.f32.mrf.mxu0 }
  0xb8   : > { %v4182_v26 = vpop.f32.mrf.mxu2 }
  0xba   : > { %v4187_v28 = vpop.f32.mrf.mxu1  ;;  %v4189_v29 = vpop.f32.mrf.mxu3  ;;  %3149 = vmatmul.msk.f32.gmra.mxu0 %vm252_vm1, %v3897_v60 }
  0xbb   : > { %5059 = vst [vmem:[#allocation10_spill] sm:$0xff] %v4189_v29 }
  0xbd   : > { %2960 = vmatmul.msk.f32.gmra.mxu1 %vm252_vm1, %v4147_v7  ;;  %3002 = vmatmul.msk.f32.gmra.mxu2 %vm252_vm1, %v4192_v30 }
  0xbf   : > { %3076 = vmatmul.msk.f32.gmra.mxu3 %vm252_vm1, %v4200_v32  ;;  %v4208_v37 = vpop.f32.mrf.mxu0 }
  0xc0   : > { %v4210_v60 = vpop.f32.mrf.mxu2 }
  0xc2   : > { %v4215_v42 = vpop.f32.mrf.mxu1  ;;  %v4217_v45 = vpop.f32.mrf.mxu3  ;;  %3150 = vmatmul.msk.f32.gmra.mxu0 %vm252_vm1, %v3932_v4 }
  0xc3   : > { %5062 = vst [vmem:[#allocation13_spill] sm:$0xff] %v4217_v45 }
  0xc5   : > { %2961 = vmatmul.msk.f32.gmra.mxu1 %vm252_vm1, %v4169_v21  ;;  %3003 = vmatmul.msk.f32.gmra.mxu2 %vm252_vm1, %v4220_v51 }
  0xc7   : > { %3077 = vmatmul.msk.f32.gmra.mxu3 %vm252_vm1, %v4225_v56  ;;  %v4233_v9 = vpop.f32.mrf.mxu0 }
  0xc8   : > { %v4235_v63 = vpop.f32.mrf.mxu2 }
  0xca   : > { %v4237_v25 = vpop.f32.mrf.mxu1  ;;  %v4239_v4 = vpop.f32.mrf.mxu3  ;;  %3151 = vmatmul.msk.f32.gmra.mxu0 %vm252_vm1, %v3954_v11  ;;  %v4264_v11 = vld [vmem:[%s3710_s26 + $0xaa] sm:$0xff] }
  0xcb   : > { %5065 = vst [vmem:[#allocation16_spill] sm:$0xff] %v4239_v4 }
  0xcc   : > { %5069 = vst [vmem:[#allocation20_spill] sm:$0xff] %v4264_v11 }
  0xcd   : > { %2962 = vmatmul.msk.f32.gmra.mxu1 %vm252_vm1, %v4200_v32  ;;  %3004 = vmatmul.msk.f32.gmra.mxu2 %vm252_vm1, %v4242_v52  ;;  %v3280_v52 = vld [vmem:[%s5027_s1 + $0x1c8] sm:$0xff] }
  0xce   : > { %1977 = vmatpush.msra.mxu2 %v3280_v52  ;;  %v3428_v52 = vld [vmem:[%s5027_s1 + $0x258] sm:$0xff] }
  0xcf   : > { %3078 = vmatmul.msk.f32.gmra.mxu3 %vm252_vm1, %v4247_v31  ;;  %v4255_v38 = vpop.f32.mrf.mxu0  ;;  %2549 = vmatpush.msra.mxu0 %v3428_v52 }
  0xd0   : > { %v4257_v45 = vpop.f32.mrf.mxu2 }
  0xd2   : > { %v4259_v4 = vpop.f32.mrf.mxu1  ;;  %v4261_v29 = vpop.f32.mrf.mxu3  ;;  %3152 = vmatmul.msk.f32.gmra.mxu0 %vm252_vm1, %v3971_v16 }
  0xd3   : > { %5068 = vst [vmem:[#allocation19_spill] sm:$0xff] %v4261_v29  ;;  %v3354_v29 = vld [vmem:[%s5027_s1 + $0x210] sm:$0xff] }
  0xd4   : > { %2263 = vmatpush.msra.mxu3 %v3354_v29  ;;  %v4300_v29 = vld [vmem:[%s3710_s26 + $0xc8] sm:$0xff] }
  0xd5   : > { %2963 = vmatmul.msk.f32.gmra.mxu1 %vm252_vm1, %v4225_v56  ;;  %3005 = vmatmul.msk.f32.gmra.mxu2 %vm252_vm1, %v4264_v11  ;;  %v3206_v11 = vld [vmem:[%s5027_s1 + $0x180] sm:$0xff] }
  0xd6   : > { %1690 = vmatpush.msra.mxu1 %v3206_v11 }
  0xd7   : > { %3079 = vmatmul.msk.f32.gmra.mxu3 %vm252_vm1, %v4269_v20  ;;  %v4283_v16 = vpop.f32.mrf.mxu0 }
  0xd8   : > { %v4285_v32 = vpop.f32.mrf.mxu2 }
  0xd9   : > { %5071 = vst [vmem:[#allocation22_spill] sm:$0xff] %v4285_v32  ;;  %v4338_v32 = vld [vmem:[%s3710_s26 + $0xe0] sm:$0xff] }
  0xda   : > { %v4290_v56 = vpop.f32.mrf.mxu1  ;;  %v4292_v51 = vpop.f32.mrf.mxu3  ;;  %3153 = vmatmul.msk.f32.gmra.mxu0 %vm252_vm1, %v3719_v10 }
  0xdb   : > { %5072 = vst [vmem:[#allocation23_spill] sm:$0xff] %v4292_v51 }
  0xdd   : > { %2964 = vmatmul.msk.f32.gmra.mxu1 %vm252_vm1, %v4247_v31  ;;  %3006 = vmatmul.msk.f32.gmra.mxu2 %vm252_vm1, %v4295_v2  ;;  %v4318_v31 = vld [vmem:[%s3710_s26 + $0xc2] sm:$0xff]  ;;  %v4323_v2 = vld [vmem:[%s3710_s26 + $0xd8] sm:$0xff] }
  0xde   : > { %5076 = vst [vmem:[#allocation27_spill] sm:$0xff] %v4318_v31 }
  0xdf   : > { %3080 = vmatmul.msk.f32.gmra.mxu3 %vm252_vm1, %v4300_v29  ;;  %v4311_v51 = vpop.f32.mrf.mxu0 }
  0xe0   : > { %v4313_v10 = vpop.f32.mrf.mxu2 }
  0xe1   : > { %5074 = vst [vmem:[#allocation25_spill] sm:$0xff] %v4313_v10 }
  0xe2   : > { %v4315_v11 = vpop.f32.mrf.mxu3  ;;  %v582_v21 = vpop.f32.mrf.mxu1  ;;  %3154 = vmatmul.msk.f32.gmra.mxu0 %vm252_vm1, %v3768_v24  ;;  %v4333_v24 = vld [vmem:[%s3710_s26 + $0xca] sm:$0xff] }
  0xe3   : > { %5075 = vst [vmem:[#allocation26_spill] sm:$0xff] %v4315_v11  ;;  %v583_v52 = vadd.f32 %v582_v21, %v4133_v0 }
  0xe5   : > { %2965 = vmatmul.msk.f32.gmra.mxu1 %vm252_vm1, %v4269_v20  ;;  %3007 = vmatmul.msk.f32.gmra.mxu2 %vm252_vm1, %v4318_v31 }
  0xe7   : > { %3081 = vmatmul.msk.f32.gmra.mxu3 %vm252_vm1, %v4323_v2  ;;  %v1409_v11 = vpop.f32.mrf.mxu0 }
  0xe8   : > { %v836_v30 = vpop.f32.mrf.mxu2 }
  0xe9   : > { %v932_v10 = vadd.f32 %v836_v30, %v583_v52 }
  0xea   : > { %v585_v7 = vpop.f32.mrf.mxu1  ;;  %v1123_v39 = vpop.f32.mrf.mxu3  ;;  %3155 = vmatmul.msk.f32.gmra.mxu0 %vm252_vm1, %v3822_v40 }
  0xeb   : > { %v1219_v20 = vadd.f32 %v1123_v39, %v932_v10  ;;  %v586_v0 = vadd.f32 %v585_v7, %v4155_v8  ;;  %v3353_v7 = vld [vmem:[%s5027_s1 + $0x208] sm:$0xff]  ;;  %v4361_v8 = vld [vmem:[%s3710_s26 + $0xf0] sm:$0xff] }
  0xec   : > { %2264 = vmatpush.msra.mxu3 %v3353_v7  ;;  %v4376_v7 = vld [vmem:[%s3710_s26 + $0xe2] sm:$0xff] }
  0xed   : > { %v4340_v31 = vadd.f32 %v1409_v11, %v1219_v20  ;;  %2966 = vmatmul.msk.f32.gmra.mxu1 %vm252_vm1, %v4300_v29  ;;  %3008 = vmatmul.msk.f32.gmra.mxu2 %vm252_vm1, %v4333_v24  ;;  %v3279_v20 = vld [vmem:[%s5027_s1 + $0x1c0] sm:$0xff] }
  0xee   : > { %v4353_v11 = vld [vmem:[%s3710_s26 + $0xda] sm:$0xff]  ;;  %1978 = vmatpush.msra.mxu2 %v3279_v20 }
  0xef   : > { %5077 = vst [vmem:[#allocation28_spill] sm:$0xff] %v4340_v31  ;;  %3082 = vmatmul.msk.f32.gmra.mxu3 %vm252_vm1, %v4338_v32  ;;  %v1412_v21 = vpop.f32.mrf.mxu0 }
  0xf0   : > { %v839_v30 = vpop.f32.mrf.mxu2 }
  0xf1   : > { %v933_v40 = vadd.f32 %v839_v30, %v586_v0 }
  0xf2   : > { %v588_v39 = vpop.f32.mrf.mxu1  ;;  %v1126_v10 = vpop.f32.mrf.mxu3  ;;  %3156 = vmatmul.msk.f32.gmra.mxu0 %vm252_vm1, %v3868_v53  ;;  %v3205_v53 = vld [vmem:[%s5027_s1 + $0x178] sm:$0xff] }
  0xf3   : > { %v1220_v52 = vadd.f32 %v1126_v10, %v933_v40  ;;  %1691 = vmatpush.msra.mxu1 %v3205_v53  ;;  %v589_v30 = vadd.f32 %v588_v39, %v4177_v22  ;;  %v3427_v53 = vld [vmem:[%s5027_s1 + $0x250] sm:$0xff]  ;;  %v4384_v22 = vld [vmem:[%s3710_s26 + $0xf8] sm:$0xff] }
  0xf4   : > { %2550 = vmatpush.msra.mxu0 %v3427_v53  ;;  %v4396_v53 = vld [vmem:[%s3710_s26 + $0xf2] sm:$0xff] }
  0xf5   : > { %v4363_v0 = vadd.f32 %v1412_v21, %v1220_v52  ;;  %2967 = vmatmul.msk.f32.gmra.mxu1 %vm252_vm1, %v4323_v2  ;;  %3009 = vmatmul.msk.f32.gmra.mxu2 %vm252_vm1, %v4353_v11 }
  0xf7   : > { %5078 = vst [vmem:[#allocation29_spill] sm:$0xff] %v4363_v0  ;;  %3083 = vmatmul.msk.f32.gmra.mxu3 %vm252_vm1, %v4361_v8  ;;  %v1415_v40 = vpop.f32.mrf.mxu0 }
  0xf8   : > { %v842_v21 = vpop.f32.mrf.mxu2 }
  0xf9   : > { %v934_v20 = vadd.f32 %v842_v21, %v589_v30 }
  0xfa   : > { %v591_v10 = vpop.f32.mrf.mxu1  ;;  %v1129_v52 = vpop.f32.mrf.mxu3  ;;  %3157 = vmatmul.msk.f32.gmra.mxu0 %vm252_vm1, %v3900_v61 }
  0xfb   : > { %v1221_v0 = vadd.f32 %v1129_v52, %v934_v20  ;;  %v592_v30 = vadd.f32 %v591_v10, %v4208_v37 }
  0xfd   : > { %v4386_v39 = vadd.f32 %v1415_v40, %v1221_v0  ;;  %2968 = vmatmul.msk.f32.gmra.mxu1 %vm252_vm1, %v4338_v32  ;;  %3010 = vmatmul.msk.f32.gmra.mxu2 %vm252_vm1, %v4376_v7  ;;  %v4401_v40 = vld [vmem:[%s3710_s26 + $0x108] sm:$0xff] }
  0xff   : > { %5079 = vst [vmem:[#allocation30_spill] sm:$0xff] %v4386_v39  ;;  %3084 = vmatmul.msk.f32.gmra.mxu3 %vm252_vm1, %v4384_v22  ;;  %v1418_v61 = vpop.f32.mrf.mxu0 }
 0x100   : > { %v845_v21 = vpop.f32.mrf.mxu2 }
 0x101   : > { %v935_v20 = vadd.f32 %v845_v21, %v592_v30 }
 0x102   : > { %v594_v52 = vpop.f32.mrf.mxu1  ;;  %v1132_v31 = vpop.f32.mrf.mxu3  ;;  %3158 = vmatmul.msk.f32.gmra.mxu0 %vm252_vm1, %v3935_v5 }
 0x103   : > { %v1222_v0 = vadd.f32 %v1132_v31, %v935_v20  ;;  %v595_v37 = vadd.f32 %v594_v52, %v4233_v9  ;;  %v4413_v20 = vld [vmem:[%s3710_s26 + $0xfa] sm:$0xff] }
 0x104   : > { %v3278_v9 = vld [vmem:[%s5027_s1 + $0x1b8] sm:$0xff] }
 0x105   : > { %v4403_v39 = vadd.f32 %v1418_v61, %v1222_v0  ;;  %2969 = vmatmul.msk.f32.gmra.mxu1 %vm252_vm1, %v4361_v8  ;;  %3011 = vmatmul.msk.f32.gmra.mxu2 %vm252_vm1, %v4396_v53  ;;  %v4418_v0 = vld [vmem:[%s3710_s26 + $0x110] sm:$0xff] }
 0x106   : > { %1979 = vmatpush.msra.mxu2 %v3278_v9  ;;  %v4439_v9 = vld [vmem:[%s3710_s26 + $0x10a] sm:$0xff] }
 0x107   : > { %5080 = vst [vmem:[#allocation31_spill] sm:$0xff] %v4403_v39  ;;  %3085 = vmatmul.msk.f32.gmra.mxu3 %vm252_vm1, %v4401_v40  ;;  %v1421_v10 = vpop.f32.mrf.mxu0 }
 0x108   : > { %v848_v30 = vpop.f32.mrf.mxu2 }
 0x109   : > { %v936_v5 = vadd.f32 %v848_v30, %v595_v37  ;;  %v3352_v37 = vld [vmem:[%s5027_s1 + $0x200] sm:$0xff] }
 0x10a   : > { %v597_v21 = vpop.f32.mrf.mxu1  ;;  %v1135_v31 = vpop.f32.mrf.mxu3  ;;  %3159 = vmatmul.msk.f32.gmra.mxu0 %vm252_vm1, %v3957_v13  ;;  %2265 = vmatpush.msra.mxu3 %v3352_v37  ;;  %v3426_v37 = vld [vmem:[%s5027_s1 + $0x248] sm:$0xff] }
 0x10b   : > { %v1223_v61 = vadd.f32 %v1135_v31, %v936_v5  ;;  %v598_v13 = vadd.f32 %v597_v21, %v4255_v38  ;;  %v3204_v5 = vld [vmem:[%s5027_s1 + $0x170] sm:$0xff]  ;;  %v4444_v21 = vld [vmem:[%s3710_s26 + $0x120] sm:$0xff]  ;;  %2551 = vmatpush.msra.mxu0 %v3426_v37 }
 0x10c   : > { %1692 = vmatpush.msra.mxu1 %v3204_v5 }
 0x10d   : > { %v4420_v39 = vadd.f32 %v1421_v10, %v1223_v61  ;;  %2970 = vmatmul.msk.f32.gmra.mxu1 %vm252_vm1, %v4384_v22  ;;  %3012 = vmatmul.msk.f32.gmra.mxu2 %vm252_vm1, %v4413_v20 }
 0x10f   : > { %5081 = vst [vmem:[#allocation32_spill] sm:$0xff] %v4420_v39  ;;  %3086 = vmatmul.msk.f32.gmra.mxu3 %vm252_vm1, %v4418_v0  ;;  %v1424_v52 = vpop.f32.mrf.mxu0 }
 0x110   : > { %v851_v10 = vpop.f32.mrf.mxu2 }
 0x111   : > { %v937_v30 = vadd.f32 %v851_v10, %v598_v13 }
 0x112   : > { %v600_v31 = vpop.f32.mrf.mxu1  ;;  %v1138_v61 = vpop.f32.mrf.mxu3  ;;  %3160 = vmatmul.msk.f32.gmra.mxu0 %vm252_vm1, %v3974_v17 }
 0x113   : > { %v1224_v38 = vadd.f32 %v1138_v61, %v937_v30  ;;  %v601_v13 = vadd.f32 %v600_v31, %v4283_v16  ;;  %v4459_v61 = vld [vmem:[%s3710_s26 + $0x112] sm:$0xff]  ;;  %v4464_v31 = vld [vmem:[%s3710_s26 + $0x128] sm:$0xff] }
 0x115   : > { %v4446_v39 = vadd.f32 %v1424_v52, %v1224_v38  ;;  %2971 = vmatmul.msk.f32.gmra.mxu1 %vm252_vm1, %v4401_v40  ;;  %3013 = vmatmul.msk.f32.gmra.mxu2 %vm252_vm1, %v4439_v9 }
 0x117   : > { %5082 = vst [vmem:[#allocation33_spill] sm:$0xff] %v4446_v39  ;;  %3087 = vmatmul.msk.f32.gmra.mxu3 %vm252_vm1, %v4444_v21  ;;  %v1427_v17 = vpop.f32.mrf.mxu0 }
 0x118   : > { %v854_v10 = vpop.f32.mrf.mxu2 }
 0x119   : > { %v938_v52 = vadd.f32 %v854_v10, %v601_v13 }
 0x11a   : > { %v603_v30 = vpop.f32.mrf.mxu1  ;;  %v1141_v5 = vpop.f32.mrf.mxu3  ;;  %3161 = vmatmul.msk.f32.gmra.mxu0 %vm252_vm1, %v3725_v12 }
 0x11b   : > { %v1225_v16 = vadd.f32 %v1141_v5, %v938_v52  ;;  %v604_v13 = vadd.f32 %v603_v30, %v4311_v51  ;;  %v4476_v5 = vld [vmem:[%s3710_s26 + $0x122] sm:$0xff] }
 0x11d   : > { %v4466_v38 = vadd.f32 %v1427_v17, %v1225_v16  ;;  %2972 = vmatmul.msk.f32.gmra.mxu1 %vm252_vm1, %v4418_v0  ;;  %3014 = vmatmul.msk.f32.gmra.mxu2 %vm252_vm1, %v4459_v61  ;;  %v4481_v16 = vld [vmem:[%s3710_s26 + $0x138] sm:$0xff] }
 0x11f   : > { %5083 = vst [vmem:[#allocation34_spill] sm:$0xff] %v4466_v38  ;;  %3088 = vmatmul.msk.f32.gmra.mxu3 %vm252_vm1, %v4464_v31  ;;  %v1430_v37 = vpop.f32.mrf.mxu0 }
 0x120   : > { %v857_v10 = vpop.f32.mrf.mxu2 }
 0x121   : > { %v939_v12 = vadd.f32 %v857_v10, %v604_v13 }
 0x122   : > { %v606_v39 = vpop.f32.mrf.mxu1  ;;  %v1144_v52 = vpop.f32.mrf.mxu3  ;;  %3162 = vmatmul.msk.f32.gmra.mxu0 %vm252_vm1, %v3779_v27 }
 0x123   : > { %v1226_v17 = vadd.f32 %v1144_v52, %v939_v12  ;;  %v607_v51 = vadd.f32 %v606_v39, %v4114_v57  ;;  %v4496_v52 = vld [vmem:[%s3710_s26 + $0x12a] sm:$0xff]  ;;  %v3351_v57 = vld [vmem:[%s5027_s1 + $0x1f8] sm:$0xff]  ;;  %v4504_v39 = vld [vmem:[%s3710_s26 + $0x140] sm:$0xff] }
 0x124   : > { %2266 = vmatpush.msra.mxu3 %v3351_v57  ;;  %v4519_v57 = vld [vmem:[%s3710_s26 + $0x13a] sm:$0xff] }
 0x125   : > { %v4483_v38 = vadd.f32 %v1430_v37, %v1226_v17  ;;  %2973 = vmatmul.msk.f32.gmra.mxu1 %vm252_vm1, %v4444_v21  ;;  %3015 = vmatmul.msk.f32.gmra.mxu2 %vm252_vm1, %v4476_v5  ;;  %v3277_v37 = vld [vmem:[%s5027_s1 + $0x1b0] sm:$0xff] }
 0x126   : > { %1980 = vmatpush.msra.mxu2 %v3277_v37 }
 0x127   : > { %5084 = vst [vmem:[#allocation35_spill] sm:$0xff] %v4483_v38  ;;  %3089 = vmatmul.msk.f32.gmra.mxu3 %vm252_vm1, %v4481_v16  ;;  %v1433_v30 = vpop.f32.mrf.mxu0 }
 0x128   : > { %v860_v13 = vpop.f32.mrf.mxu2 }
 0x129   : > { %v940_v27 = vadd.f32 %v860_v13, %v607_v51 }
 0x12a   : > { %v609_v10 = vpop.f32.mrf.mxu1  ;;  %v1147_v12 = vpop.f32.mrf.mxu3  ;;  %3163 = vmatmul.msk.f32.gmra.mxu0 %vm252_vm1, %v3832_v43  ;;  %v3203_v43 = vld [vmem:[%s5027_s1 + $0x168] sm:$0xff] }
 0x12b   : > { %v1227_v17 = vadd.f32 %v1147_v12, %v940_v27  ;;  %1693 = vmatpush.msra.mxu1 %v3203_v43  ;;  %v610_v13 = vadd.f32 %v609_v10, %v4137_v1  ;;  %v3425_v43 = vld [vmem:[%s5027_s1 + $0x240] sm:$0xff]  ;;  %v4527_v1 = vld [vmem:[%s3710_s26 + $0x150] sm:$0xff] }
 0x12c   : > { %2552 = vmatpush.msra.mxu0 %v3425_v43  ;;  %v4539_v43 = vld [vmem:[%s3710_s26 + $0x142] sm:$0xff] }
 0x12d   : > { %v4506_v51 = vadd.f32 %v1433_v30, %v1227_v17  ;;  %2974 = vmatmul.msk.f32.gmra.mxu1 %vm252_vm1, %v4464_v31  ;;  %3016 = vmatmul.msk.f32.gmra.mxu2 %vm252_vm1, %v4496_v52  ;;  %5087 = vst [vmem:[#allocation38_spill] sm:$0xff] %v4539_v43 }
 0x12f   : > { %5085 = vst [vmem:[#allocation36_spill] sm:$0xff] %v4506_v51  ;;  %3090 = vmatmul.msk.f32.gmra.mxu3 %vm252_vm1, %v4504_v39  ;;  %v1436_v27 = vpop.f32.mrf.mxu0 }
 0x130   : > { %v863_v30 = vpop.f32.mrf.mxu2 }
 0x131   : > { %v941_v37 = vadd.f32 %v863_v30, %v610_v13 }
 0x132   : > { %v612_v12 = vpop.f32.mrf.mxu1  ;;  %v1150_v17 = vpop.f32.mrf.mxu3  ;;  %3164 = vmatmul.msk.f32.gmra.mxu0 %vm252_vm1, %v3873_v54 }
 0x133   : > { %v1228_v51 = vadd.f32 %v1150_v17, %v941_v37  ;;  %v613_v13 = vadd.f32 %v612_v12, %v4159_v19 }
 0x135   : > { %v4529_v10 = vadd.f32 %v1436_v27, %v1228_v51  ;;  %2975 = vmatmul.msk.f32.gmra.mxu1 %vm252_vm1, %v4481_v16  ;;  %3017 = vmatmul.msk.f32.gmra.mxu2 %vm252_vm1, %v4519_v57  ;;  %v4544_v27 = vld [vmem:[%s3710_s26 + $0x158] sm:$0xff] }
 0x137   : > { %5086 = vst [vmem:[#allocation37_spill] sm:$0xff] %v4529_v10  ;;  %3091 = vmatmul.msk.f32.gmra.mxu3 %vm252_vm1, %v4527_v1  ;;  %v1439_v54 = vpop.f32.mrf.mxu0 }
 0x138   : > { %v866_v30 = vpop.f32.mrf.mxu2 }
 0x139   : > { %v942_v37 = vadd.f32 %v866_v30, %v613_v13 }
 0x13a   : > { %v615_v17 = vpop.f32.mrf.mxu1  ;;  %v1153_v38 = vpop.f32.mrf.mxu3  ;;  %3165 = vmatmul.msk.f32.gmra.mxu0 %vm252_vm1, %v3905_v62 }
 0x13b   : > { %v1229_v51 = vadd.f32 %v1153_v38, %v942_v37  ;;  %v616_v19 = vadd.f32 %v615_v17, %v4187_v28  ;;  %v4556_v37 = vld [vmem:[%s3710_s26 + $0x152] sm:$0xff] }
 0x13d   : > { %v4546_v10 = vadd.f32 %v1439_v54, %v1229_v51  ;;  %2976 = vmatmul.msk.f32.gmra.mxu1 %vm252_vm1, %v4504_v39  ;;  %3018 = vmatmul.msk.f32.gmra.mxu2 %vm252_vm1, %v4539_v43  ;;  %v3051_v51 = vld [vmem:[%s3710_s26 + $0x168] sm:$0xff] }
 0x13f   : > { %5088 = vst [vmem:[#allocation39_spill] sm:$0xff] %v4546_v10  ;;  %3092 = vmatmul.msk.f32.gmra.mxu3 %vm252_vm1, %v4544_v27  ;;  %v1442_v12 = vpop.f32.mrf.mxu0 }
 0x140   : > { %v869_v13 = vpop.f32.mrf.mxu2 }
 0x141   : > { %v943_v62 = vadd.f32 %v869_v13, %v616_v19 }
 0x142   : > { %v618_v30 = vpop.f32.mrf.mxu1  ;;  %v1156_v38 = vpop.f32.mrf.mxu3  ;;  %3166 = vmatmul.msk.f32.gmra.mxu0 %vm252_vm1, %v3940_v6 }
 0x143   : > { %v1230_v54 = vadd.f32 %v1156_v38, %v943_v62  ;;  %v619_v28 = vadd.f32 %v618_v30, %v4215_v42  ;;  %v4570_v62 = vld [vmem:[%s3710_s26 + $0x15a] sm:$0xff]  ;;  %v4575_v38 = vld [vmem:[%s3710_s26 + $0x170] sm:$0xff] }
 0x145   : > { %v4561_v10 = vadd.f32 %v1442_v12, %v1230_v54  ;;  %2977 = vmatmul.msk.f32.gmra.mxu1 %vm252_vm1, %v4527_v1  ;;  %3019 = vmatmul.msk.f32.gmra.mxu2 %vm252_vm1, %v4556_v37 }
 0x147   : > { %5089 = vst [vmem:[#allocation40_spill] sm:$0xff] %v4561_v10  ;;  %3093 = vmatmul.msk.f32.gmra.mxu3 %vm252_vm1, %v3051_v51  ;;  %v1445_v17 = vpop.f32.mrf.mxu0  ;;  %v4603_v10 = vld [vmem:[%s3710_s26 + $0x172] sm:$0xff] }
 0x148   : > { %v872_v19 = vpop.f32.mrf.mxu2 }
 0x149   : > { %v944_v13 = vadd.f32 %v872_v19, %v619_v28 }
 0x14a   : > { %v621_v43 = vpop.f32.mrf.mxu1  ;;  %v1159_v6 = vpop.f32.mrf.mxu3  ;;  %3167 = vmatmul.msk.f32.gmra.mxu0 %vm252_vm1, %v3961_v14 }
 0x14b   : > { %v1231_v12 = vadd.f32 %v1159_v6, %v944_v13  ;;  %v622_v42 = vadd.f32 %v621_v43, %v4237_v25 }
 0x14d   : > { %v4577_v54 = vadd.f32 %v1445_v17, %v1231_v12  ;;  %2978 = vmatmul.msk.f32.gmra.mxu1 %vm252_vm1, %v4544_v27  ;;  %3020 = vmatmul.msk.f32.gmra.mxu2 %vm252_vm1, %v4570_v62  ;;  %v4587_v17 = vld [vmem:[%s3710_s26 + $0x16a] sm:$0xff]  ;;  %v3053_v12 = vld [vmem:[%s3710_s26 + $0x180] sm:$0xff] }
 0x14f   : > { %5090 = vst [vmem:[#allocation41_spill] sm:$0xff] %v4577_v54  ;;  %3094 = vmatmul.msk.f32.gmra.mxu3 %vm252_vm1, %v4575_v38  ;;  %v1448_v30 = vpop.f32.mrf.mxu0 }
 0x150   : > { %v875_v14 = vpop.f32.mrf.mxu2 }
 0x151   : > { %v945_v28 = vadd.f32 %v875_v14, %v622_v42  ;;  %v4600_v42 = vld [vmem:[%s3710_s26 + $0x181] sm:$0xff] }
 0x152   : > { %v624_v19 = vpop.f32.mrf.mxu1  ;;  %v1162_v13 = vpop.f32.mrf.mxu3  ;;  %3168 = vmatmul.msk.f32.gmra.mxu0 %vm252_vm1, %v3978_v18 }
 0x153   : > { %v1232_v6 = vadd.f32 %v1162_v13, %v945_v28  ;;  %v625_v25 = vadd.f32 %v624_v19, %v4259_v4 }
 0x155   : > { %v4592_v54 = vadd.f32 %v1448_v30, %v1232_v6  ;;  %2979 = vmatmul.msk.f32.gmra.mxu1 %vm252_vm1, %v3051_v51  ;;  %3021 = vmatmul.msk.f32.gmra.mxu2 %vm252_vm1, %v4587_v17  ;;  %v3054_v30 = vld [vmem:[%s3710_s26 + $0x188] sm:$0xff] }
 0x157   : > { %5091 = vst [vmem:[#allocation42_spill] sm:$0xff] %v4592_v54  ;;  %3095 = vmatmul.msk.f32.gmra.mxu3 %vm252_vm1, %v3053_v12  ;;  %v1451_v43 = vpop.f32.mrf.mxu0  ;;  %v4617_v12 = vld [vmem:[%s3710_s26 + $0x189] sm:$0xff] }
 0x158   : > { %v878_v14 = vpop.f32.mrf.mxu2 }
 0x159   : > { %v946_v18 = vadd.f32 %v878_v14, %v625_v25 }
 0x15a   : > { %v627_v28 = vpop.f32.mrf.mxu1  ;;  %v1165_v13 = vpop.f32.mrf.mxu3  ;;  %3169 = vmatmul.msk.f32.gmra.mxu0 %vm252_vm1, %v4600_v42 }
 0x15b   : > { %v1233_v51 = vadd.f32 %v1165_v13, %v946_v18  ;;  %v628_v4 = vadd.f32 %v627_v28, %v4290_v56  ;;  %v3319_v13 = vld [vmem:[%s3710_s26 + $0x31] sm:$0xff] }
 0x15d   : > { %v4608_v6 = vadd.f32 %v1451_v43, %v1233_v51  ;;  %2980 = vmatmul.msk.f32.gmra.mxu1 %vm252_vm1, %v4575_v38  ;;  %3022 = vmatmul.msk.f32.gmra.mxu2 %vm252_vm1, %v4603_v10 }
 0x15f   : > { %5092 = vst [vmem:[#allocation43_spill] sm:$0xff] %v4608_v6  ;;  %3096 = vmatmul.msk.f32.gmra.mxu3 %vm252_vm1, %v3054_v30  ;;  %v1454_v19 = vpop.f32.mrf.mxu0 }
 0x160   : > { %v881_v25 = vpop.f32.mrf.mxu2 }
 0x161   : > { %v947_v14 = vadd.f32 %v881_v25, %v628_v4 }
 0x162   : > { %v630_v54 = vpop.f32.mrf.mxu1  ;;  %v1168_v18 = vpop.f32.mrf.mxu3  ;;  %3170 = vmatmul.msk.f32.gmra.mxu0 %vm252_vm1, %v4617_v12 }
 0x163   : > { %v1234_v43 = vadd.f32 %v1168_v18, %v947_v14  ;;  %v631_v56 = vadd.f32 %v630_v54, %v4135_v23  ;;  %v3320_v14 = vld [vmem:[%s3710_s26 + $0x39] sm:$0xff] }
 0x165   : > { %v4622_v51 = vadd.f32 %v1454_v19, %v1234_v43  ;;  %3213 = vmatmul.msk.f32.vlgmr.msra.gmra.mxu1 %vm252_vm1, %v4015_v33  ;;  %3287 = vmatmul.msk.f32.vlgmr.msra.gmra.mxu2 %vm252_vm1, %v4020_v34 }
 0x167   : > { %3361 = vmatmul.msk.f32.vlgmr.msra.gmra.mxu3 %vm252_vm1, %v3319_v13  ;;  %v1457_v28 = vpop.f32.mrf.mxu0 }
 0x168   : > { %v884_v30 = vpop.f32.mrf.mxu2 }
 0x169   : > { %v948_v4 = vadd.f32 %v884_v30, %v631_v56  ;;  %v3321_v56 = vld [vmem:[%s3710_s26 + $0x49] sm:$0xff] }
 0x16a   : > { %v633_v25 = vpop.f32.mrf.mxu1  ;;  %v1171_v6 = vpop.f32.mrf.mxu3  ;;  %3435 = vmatmul.msk.f32.vlgmr.msra.gmra.mxu0 %vm252_vm1, %v4047_v41 }
 0x16b   : > { %v1235_v19 = vadd.f32 %v1171_v6, %v948_v4  ;;  %v634_v33 = vadd.f32 %v633_v25, %v4157_v15 }
 0x16d   : > { %v4633_v18 = vadd.f32 %v1457_v28, %v1235_v19  ;;  %3214 = vmatmul.msk.f32.gmra.mxu1 %vm252_vm1, %v4028_v35  ;;  %3288 = vmatmul.msk.f32.gmra.mxu2 %vm252_vm1, %v4033_v36 }
 0x16f   : > { %3362 = vmatmul.msk.f32.gmra.mxu3 %vm252_vm1, %v3320_v14  ;;  %v1460_v34 = vpop.f32.mrf.mxu0  ;;  %v3322_v14 = vld [vmem:[%s3710_s26 + $0x51] sm:$0xff] }
 0x170   : > { %v887_v23 = vpop.f32.mrf.mxu2 }
 0x171   : > { %v949_v54 = vadd.f32 %v887_v23, %v634_v33 }
 0x172   : > { %v636_v43 = vpop.f32.mrf.mxu1  ;;  %v1174_v13 = vpop.f32.mrf.mxu3  ;;  %3436 = vmatmul.msk.f32.gmra.mxu0 %vm252_vm1, %v4066_v46 }
 0x173   : > { %v1236_v6 = vadd.f32 %v1174_v13, %v949_v54  ;;  %v637_v35 = vadd.f32 %v636_v43, %v4182_v26  ;;  %v3323_v13 = vld [vmem:[%s3710_s26 + $0x61] sm:$0xff] }
 0x175   : > { %v4644_v28 = vadd.f32 %v1460_v34, %v1236_v6  ;;  %3215 = vmatmul.msk.f32.gmra.mxu1 %vm252_vm1, %v4047_v41  ;;  %3289 = vmatmul.msk.f32.gmra.mxu2 %vm252_vm1, %v4054_v44 }
 0x177   : > { %3363 = vmatmul.msk.f32.gmra.mxu3 %vm252_vm1, %v3321_v56  ;;  %v1463_v36 = vpop.f32.mrf.mxu0 }
 0x178   : > { %v890_v15 = vpop.f32.mrf.mxu2 }
 0x179   : > { %v950_v30 = vadd.f32 %v890_v15, %v637_v35 }
 0x17a   : > { %v639_v4 = vpop.f32.mrf.mxu1  ;;  %v1177_v25 = vpop.f32.mrf.mxu3  ;;  %3437 = vmatmul.msk.f32.gmra.mxu0 %vm252_vm1, %v4079_v48 }
 0x17b   : > { %v1237_v19 = vadd.f32 %v1177_v25, %v950_v30  ;;  %v640_v41 = vadd.f32 %v639_v4, %v4210_v60  ;;  %v3324_v30 = vld [vmem:[%s3710_s26 + $0x69] sm:$0xff] }
 0x17d   : > { %v4655_v33 = vadd.f32 %v1463_v36, %v1237_v19  ;;  %3216 = vmatmul.msk.f32.gmra.mxu1 %vm252_vm1, %v4066_v46  ;;  %3290 = vmatmul.msk.f32.gmra.mxu2 %vm252_vm1, %v4070_v47 }
 0x17f   : > { %3364 = vmatmul.msk.f32.gmra.mxu3 %vm252_vm1, %v3322_v14  ;;  %v1466_v44 = vpop.f32.mrf.mxu0 }
 0x180   : > { %v893_v26 = vpop.f32.mrf.mxu2 }
 0x181   : > { %v951_v34 = vadd.f32 %v893_v26, %v640_v41 }
 0x182   : > { %v642_v23 = vpop.f32.mrf.mxu1  ;;  %v1180_v54 = vpop.f32.mrf.mxu3  ;;  %3438 = vmatmul.msk.f32.gmra.mxu0 %vm252_vm1, %v4092_v50 }
 0x183   : > { %v1238_v43 = vadd.f32 %v1180_v54, %v951_v34  ;;  %v643_v46 = vadd.f32 %v642_v23, %v4235_v63 }
 0x185   : > { %v4666_v6 = vadd.f32 %v1466_v44, %v1238_v43  ;;  %3217 = vmatmul.msk.f32.gmra.mxu1 %vm252_vm1, %v4079_v48  ;;  %3291 = vmatmul.msk.f32.gmra.mxu2 %vm252_vm1, %v4083_v49  ;;  %v3325_v44 = vld [vmem:[%s3710_s26 + $0x79] sm:$0xff] }
 0x187   : > { %3365 = vmatmul.msk.f32.gmra.mxu3 %vm252_vm1, %v3323_v13  ;;  %v1469_v47 = vpop.f32.mrf.mxu0  ;;  %v5094_v13 = vld [vmem:[#allocation8_spill] sm:$0xff] }
 0x188   : > { %v896_v60 = vpop.f32.mrf.mxu2 }
 0x189   : > { %v952_v56 = vadd.f32 %v896_v60, %v643_v46 }
 0x18a   : > { %v645_v35 = vpop.f32.mrf.mxu1  ;;  %v1183_v36 = vpop.f32.mrf.mxu3  ;;  %3439 = vmatmul.msk.f32.gmra.mxu0 %vm252_vm1, %v4117_v58 }
 0x18b   : > { %v1239_v15 = vadd.f32 %v1183_v36, %v952_v56  ;;  %v646_v48 = vadd.f32 %v645_v35, %v4257_v45 }
 0x18d   : > { %v4677_v4 = vadd.f32 %v1469_v47, %v1239_v15  ;;  %3218 = vmatmul.msk.f32.gmra.mxu1 %vm252_vm1, %v4092_v50  ;;  %3292 = vmatmul.msk.f32.gmra.mxu2 %vm252_vm1, %v4100_v55  ;;  %v5093_v50 = vld [vmem:[#allocation22_spill] sm:$0xff] }
 0x18e   : > { %v3326_v47 = vld [vmem:[%s3710_s26 + $0x81] sm:$0xff] }
 0x18f   : > { %3366 = vmatmul.msk.f32.gmra.mxu3 %vm252_vm1, %v3324_v30  ;;  %v1472_v49 = vpop.f32.mrf.mxu0 }
 0x190   : > { %v899_v63 = vpop.f32.mrf.mxu2 }
 0x191   : > { %v953_v25 = vadd.f32 %v899_v63, %v646_v48 }
 0x192   : > { %v648_v19 = vpop.f32.mrf.mxu1  ;;  %v1186_v14 = vpop.f32.mrf.mxu3  ;;  %3440 = vmatmul.msk.f32.gmra.mxu0 %vm252_vm1, %v4142_v3 }
 0x193   : > { %v1240_v41 = vadd.f32 %v1186_v14, %v953_v25  ;;  %v649_v55 = vadd.f32 %v648_v19, %v5093_v50  ;;  %v3327_v25 = vld [vmem:[%s3710_s26 + $0x91] sm:$0xff]  ;;  %v5099_v14 = vld [vmem:[#allocation5_spill] sm:$0xff] }
 0x195   : > { %v4688_v26 = vadd.f32 %v1472_v49, %v1240_v41  ;;  %3219 = vmatmul.msk.f32.gmra.mxu1 %vm252_vm1, %v4117_v58  ;;  %3293 = vmatmul.msk.f32.gmra.mxu2 %vm252_vm1, %v4122_v59  ;;  %v5095_v58 = vld [vmem:[#allocation6_spill] sm:$0xff]  ;;  %v5096_v59 = vld [vmem:[#allocation25_spill] sm:$0xff]  ;;  %v5097_v49 = vld [vmem:[#allocation11_spill] sm:$0xff] }
 0x197   : > { %3367 = vmatmul.msk.f32.gmra.mxu3 %vm252_vm1, %v3325_v44  ;;  %v1475_v45 = vpop.f32.mrf.mxu0 }
 0x198   : > { %v902_v34 = vpop.f32.mrf.mxu2 }
 0x199   : > { %v954_v23 = vadd.f32 %v902_v34, %v649_v55 }
 0x19a   : > { %v651_v54 = vpop.f32.mrf.mxu1  ;;  %v1189_v43 = vpop.f32.mrf.mxu3  ;;  %3441 = vmatmul.msk.f32.gmra.mxu0 %vm252_vm1, %v5094_v13 }
 0x19b   : > { %v1241_v46 = vadd.f32 %v1189_v43, %v954_v23  ;;  %v652_v56 = vadd.f32 %v651_v54, %v5096_v59  ;;  %v5100_v23 = vld [vmem:[#allocation14_spill] sm:$0xff]  ;;  %v3328_v43 = vld [vmem:[%s3710_s26 + $0x99] sm:$0xff] }
 0x19d   : > { %v4699_v60 = vadd.f32 %v1475_v45, %v1241_v46  ;;  %3220 = vmatmul.msk.f32.gmra.mxu1 %vm252_vm1, %v4142_v3  ;;  %3294 = vmatmul.msk.f32.gmra.mxu2 %vm252_vm1, %v5095_v58  ;;  %v5098_v3 = vld [vmem:[#allocation9_spill] sm:$0xff] }
 0x19f   : > { %3368 = vmatmul.msk.f32.gmra.mxu3 %vm252_vm1, %v3326_v47  ;;  %v1478_v35 = vpop.f32.mrf.mxu0  ;;  %v5102_v47 = vld [vmem:[#allocation7_spill] sm:$0xff] }
 0x1a0   : > { %v905_v36 = vpop.f32.mrf.mxu2 }
 0x1a1   : > { %v955_v15 = vadd.f32 %v905_v36, %v652_v56 }
 0x1a2   : > { %v654_v30 = vpop.f32.mrf.mxu1  ;;  %v1192_v48 = vpop.f32.mrf.mxu3  ;;  %3442 = vmatmul.msk.f32.gmra.mxu0 %vm252_vm1, %v5097_v49 }
 0x1a3   : > { %v1242_v63 = vadd.f32 %v1192_v48, %v955_v15  ;;  %v655_v41 = vadd.f32 %v654_v30, %v5099_v14  ;;  %v5103_v30 = vld [vmem:[#allocation17_spill] sm:$0xff] }
 0x1a5   : > { %v4710_v19 = vadd.f32 %v1478_v35, %v1242_v63  ;;  %3221 = vmatmul.msk.f32.gmra.mxu1 %vm252_vm1, %v5094_v13  ;;  %3295 = vmatmul.msk.f32.gmra.mxu2 %vm252_vm1, %v5098_v3  ;;  %v5101_v13 = vld [vmem:[#allocation12_spill] sm:$0xff]  ;;  %v3329_v63 = vld [vmem:[%s3710_s26 + $0xa9] sm:$0xff] }
 0x1a6   : > { %v5105_v3 = vld [vmem:[#allocation10_spill] sm:$0xff] }
 0x1a7   : > { %3369 = vmatmul.msk.f32.gmra.mxu3 %vm252_vm1, %v3327_v25  ;;  %v1481_v44 = vpop.f32.mrf.mxu0 }
 0x1a8   : > { %v908_v50 = vpop.f32.mrf.mxu2 }
 0x1a9   : > { %v956_v55 = vadd.f32 %v908_v50, %v655_v41 }
 0x1aa   : > { %v657_v45 = vpop.f32.mrf.mxu1  ;;  %v1195_v34 = vpop.f32.mrf.mxu3  ;;  %3443 = vmatmul.msk.f32.gmra.mxu0 %vm252_vm1, %v5100_v23 }
 0x1ab   : > { %v1243_v54 = vadd.f32 %v1195_v34, %v956_v55  ;;  %v658_v58 = vadd.f32 %v657_v45, %v5102_v47  ;;  %v5106_v34 = vld [vmem:[#allocation20_spill] sm:$0xff]  ;;  %v5108_v47 = vld [vmem:[#allocation13_spill] sm:$0xff] }
 0x1ad   : > { %v4721_v46 = vadd.f32 %v1481_v44, %v1243_v54  ;;  %3222 = vmatmul.msk.f32.gmra.mxu1 %vm252_vm1, %v5097_v49  ;;  %3296 = vmatmul.msk.f32.gmra.mxu2 %vm252_vm1, %v5101_v13  ;;  %v5104_v49 = vld [vmem:[#allocation15_spill] sm:$0xff] }
 0x1af   : > { %3370 = vmatmul.msk.f32.gmra.mxu3 %vm252_vm1, %v3328_v43  ;;  %v1484_v59 = vpop.f32.mrf.mxu0  ;;  %v3330_v43 = vld [vmem:[%s3710_s26 + $0xb1] sm:$0xff] }
 0x1b0   : > { %v911_v56 = vpop.f32.mrf.mxu2 }
 0x1b1   : > { %v957_v35 = vadd.f32 %v911_v56, %v658_v58 }
 0x1b2   : > { %v660_v36 = vpop.f32.mrf.mxu1  ;;  %v1198_v15 = vpop.f32.mrf.mxu3  ;;  %3444 = vmatmul.msk.f32.gmra.mxu0 %vm252_vm1, %v5103_v30 }
 0x1b3   : > { %v1244_v48 = vadd.f32 %v1198_v15, %v957_v35  ;;  %v661_v14 = vadd.f32 %v660_v36, %v5105_v3 }
 0x1b5   : > { %v4732_v25 = vadd.f32 %v1484_v59, %v1244_v48  ;;  %3223 = vmatmul.msk.f32.gmra.mxu1 %vm252_vm1, %v5100_v23  ;;  %3297 = vmatmul.msk.f32.gmra.mxu2 %vm252_vm1, %v5104_v49  ;;  %v5107_v23 = vld [vmem:[#allocation18_spill] sm:$0xff]  ;;  %v5109_v48 = vld [vmem:[#allocation24_spill] sm:$0xff] }
 0x1b6   : > { %v3331_v49 = vld [vmem:[%s3710_s26 + $0xc1] sm:$0xff] }
 0x1b7   : > { %3371 = vmatmul.msk.f32.gmra.mxu3 %vm252_vm1, %v3329_v63  ;;  %v1487_v41 = vpop.f32.mrf.mxu0 }
 0x1b8   : > { %v914_v44 = vpop.f32.mrf.mxu2 }
 0x1b9   : > { %v958_v50 = vadd.f32 %v914_v44, %v661_v14  ;;  %v5111_v14 = vld [vmem:[#allocation16_spill] sm:$0xff] }
 0x1ba   : > { %v663_v55 = vpop.f32.mrf.mxu1  ;;  %v1201_v45 = vpop.f32.mrf.mxu3  ;;  %3445 = vmatmul.msk.f32.gmra.mxu0 %vm252_vm1, %v5106_v34 }
 0x1bb   : > { %v1245_v54 = vadd.f32 %v1201_v45, %v958_v50  ;;  %v664_v58 = vadd.f32 %v663_v55, %v5108_v47  ;;  %v3332_v47 = vld [vmem:[%s3710_s26 + $0xc9] sm:$0xff] }
 0x1bd   : > { %v4743_v13 = vadd.f32 %v1487_v41, %v1245_v54  ;;  %3224 = vmatmul.msk.f32.gmra.mxu1 %vm252_vm1, %v5103_v30  ;;  %3298 = vmatmul.msk.f32.gmra.mxu2 %vm252_vm1, %v5107_v23  ;;  %v5110_v30 = vld [vmem:[#allocation21_spill] sm:$0xff] }
 0x1bf   : > { %3372 = vmatmul.msk.f32.gmra.mxu3 %vm252_vm1, %v3330_v43  ;;  %v1490_v59 = vpop.f32.mrf.mxu0  ;;  %v5112_v43 = vld [vmem:[#allocation27_spill] sm:$0xff] }
 0x1c0   : > { %v917_v56 = vpop.f32.mrf.mxu2 }
 0x1c1   : > { %v959_v35 = vadd.f32 %v917_v56, %v664_v58 }
 0x1c2   : > { %v666_v36 = vpop.f32.mrf.mxu1  ;;  %v1204_v15 = vpop.f32.mrf.mxu3  ;;  %3446 = vmatmul.msk.f32.gmra.mxu0 %vm252_vm1, %v5109_v48 }
 0x1c3   : > { %v1246_v63 = vadd.f32 %v1204_v15, %v959_v35  ;;  %v667_v41 = vadd.f32 %v666_v36, %v5111_v14 }
 0x1c5   : > { %v4754_v3 = vadd.f32 %v1490_v59, %v1246_v63  ;;  %3225 = vmatmul.msk.f32.gmra.mxu1 %vm252_vm1, %v5106_v34  ;;  %3299 = vmatmul.msk.f32.gmra.mxu2 %vm252_vm1, %v5110_v30  ;;  %v5113_v34 = vld [vmem:[#allocation19_spill] sm:$0xff]  ;;  %v3333_v30 = vld [vmem:[%s3710_s26 + $0xd9] sm:$0xff] }
 0x1c7   : > { %3373 = vmatmul.msk.f32.gmra.mxu3 %vm252_vm1, %v3331_v49  ;;  %v1493_v44 = vpop.f32.mrf.mxu0 }
 0x1c8   : > { %v920_v50 = vpop.f32.mrf.mxu2 }
 0x1c9   : > { %v960_v55 = vadd.f32 %v920_v50, %v667_v41 }
 0x1ca   : > { %v669_v45 = vpop.f32.mrf.mxu1  ;;  %v1207_v54 = vpop.f32.mrf.mxu3  ;;  %3447 = vmatmul.msk.f32.gmra.mxu0 %vm252_vm1, %v5112_v43 }
 0x1cb   : > { %v1247_v23 = vadd.f32 %v1207_v54, %v960_v55  ;;  %v670_v59 = vadd.f32 %v669_v45, %v5113_v34 }
 0x1cd   : > { %v4765_v58 = vadd.f32 %v1493_v44, %v1247_v23  ;;  %3226 = vmatmul.msk.f32.gmra.mxu1 %vm252_vm1, %v5109_v48  ;;  %3300 = vmatmul.msk.f32.gmra.mxu2 %vm252_vm1, %v4300_v29  ;;  %v5114_v29 = vld [vmem:[#allocation23_spill] sm:$0xff]  ;;  %v3334_v23 = vld [vmem:[%s3710_s26 + $0xe1] sm:$0xff] }
 0x1cf   : > { %3374 = vmatmul.msk.f32.gmra.mxu3 %vm252_vm1, %v3332_v47  ;;  %v1496_v56 = vpop.f32.mrf.mxu0 }
 0x1d0   : > { %v923_v35 = vpop.f32.mrf.mxu2 }
 0x1d1   : > { %v961_v36 = vadd.f32 %v923_v35, %v670_v59 }
 0x1d2   : > { %v672_v15 = vpop.f32.mrf.mxu1  ;;  %v1210_v63 = vpop.f32.mrf.mxu3  ;;  %3448 = vmatmul.msk.f32.gmra.mxu0 %vm252_vm1, %v4333_v24 }
 0x1d3   : > { %v1248_v49 = vadd.f32 %v1210_v63, %v961_v36  ;;  %v673_v48 = vadd.f32 %v672_v15, %v5114_v29  ;;  %v3335_v63 = vld [vmem:[%s3710_s26 + $0xf1] sm:$0xff] }
 0x1d5   : > { %v4776_v14 = vadd.f32 %v1496_v56, %v1248_v49  ;;  %3227 = vmatmul.msk.f32.gmra.mxu1 %vm252_vm1, %v5112_v43  ;;  %3301 = vmatmul.msk.f32.gmra.mxu2 %vm252_vm1, %v4323_v2  ;;  %v5115_v2 = vld [vmem:[#allocation26_spill] sm:$0xff] }
 0x1d7   : > { %3375 = vmatmul.msk.f32.gmra.mxu3 %vm252_vm1, %v3333_v30  ;;  %v1499_v41 = vpop.f32.mrf.mxu0 }
 0x1d8   : > { %v926_v44 = vpop.f32.mrf.mxu2 }
 0x1d9   : > { %v962_v50 = vadd.f32 %v926_v44, %v673_v48 }
 0x1da   : > { %v675_v55 = vpop.f32.mrf.mxu1  ;;  %v1213_v45 = vpop.f32.mrf.mxu3  ;;  %3449 = vmatmul.msk.f32.gmra.mxu0 %vm252_vm1, %v4353_v11 }
 0x1db   : > { %v1249_v54 = vadd.f32 %v1213_v45, %v962_v50  ;;  %v676_v43 = vadd.f32 %v675_v55, %v5115_v2  ;;  %v3336_v55 = vld [vmem:[%s3710_s26 + $0xf9] sm:$0xff] }
 0x1dc   : > { %v5117_v45 = vld [vmem:[#allocation29_spill] sm:$0xff] }
 0x1dd   : > { %v4787_v47 = vadd.f32 %v1499_v41, %v1249_v54  ;;  %3228 = vmatmul.msk.f32.gmra.mxu1 %vm252_vm1, %v4333_v24  ;;  %3302 = vmatmul.msk.f32.gmra.mxu2 %vm252_vm1, %v4338_v32  ;;  %v5116_v32 = vld [vmem:[#allocation28_spill] sm:$0xff] }
 0x1df   : > { %3376 = vmatmul.msk.f32.gmra.mxu3 %vm252_vm1, %v3334_v23  ;;  %v1502_v34 = vpop.f32.mrf.mxu0 }
 0x1e0   : > { %v929_v59 = vpop.f32.mrf.mxu2 }
 0x1e1   : > { %v963_v56 = vadd.f32 %v929_v59, %v676_v43 }
 0x1e2   : > { %v1216_v35 = vpop.f32.mrf.mxu3  ;;  %v1695_v36 = vpop.f32.mrf.mxu1  ;;  %3450 = vmatmul.msk.f32.gmra.mxu0 %vm252_vm1, %v4376_v7 }
 0x1e3   : > { %v1250_v15 = vadd.f32 %v1216_v35, %v963_v56  ;;  %v1791_v24 = vadd.f32 %v1695_v36, %v5116_v32 }
 0x1e5   : > { %v4798_v49 = vadd.f32 %v1502_v34, %v1250_v15  ;;  %3229 = vmatmul.msk.f32.gmra.mxu1 %vm252_vm1, %v4353_v11  ;;  %3303 = vmatmul.msk.f32.gmra.mxu2 %vm252_vm1, %v4361_v8  ;;  %v4811_v11 = vld [vmem:[%s5028_s2] ss:$0 sm:$0xff]  ;;  %v5118_v15 = vld [vmem:[#allocation30_spill] sm:$0xff] }
 0x1e7   : > { %3377 = vmatmul.msk.f32.gmra.mxu3 %vm252_vm1, %v3335_v63  ;;  %v2554_v30 = vpop.f32.mrf.mxu0 }
 0x1e8   : > { %v1982_v29 = vpop.f32.mrf.mxu2 }
 0x1e9   : > { %v2078_v48 = vadd.f32 %v1982_v29, %v1791_v24 }
 0x1ea   : > { %v1698_v41 = vpop.f32.mrf.mxu1  ;;  %v2268_v44 = vpop.f32.mrf.mxu3  ;;  %3451 = vmatmul.msk.f32.gmra.mxu0 %vm252_vm1, %v4396_v53 }
 0x1eb   : > { %v2364_v50 = vadd.f32 %v2268_v44, %v2078_v48  ;;  %v1792_v54 = vadd.f32 %v1698_v41, %v5117_v45 }
 0x1ed   : > { %v2650_v8 = vadd.f32 %v2554_v30, %v2364_v50  ;;  %3230 = vmatmul.msk.f32.gmra.mxu1 %vm252_vm1, %v4376_v7  ;;  %3304 = vmatmul.msk.f32.gmra.mxu2 %vm252_vm1, %v4384_v22  ;;  %v3337_v7 = vld [vmem:[%s3710_s26 + $0x109] sm:$0xff] }
 0x1ef   : > { %3378 = vmatmul.msk.f32.gmra.mxu3 %vm252_vm1, %v3336_v55  ;;  %v2686_v23 = vadd.f32 %v4811_v11, %v2650_v8  ;;  %v2557_v2 = vpop.f32.mrf.mxu0  ;;  %v5119_v55 = vld [vmem:[#allocation31_spill] sm:$0xff] }
 0x1f0   : > { %v1985_v43 = vpop.f32.mrf.mxu2 }
 0x1f1   : > { %v2079_v34 = vadd.f32 %v1985_v43, %v1792_v54  ;;  %v2718_v59 = vmax.f32 %v2686_v23, 0.0 }
 0x1f2   : > { %v1701_v56 = vpop.f32.mrf.mxu1  ;;  %v2271_v35 = vpop.f32.mrf.mxu3  ;;  %3452 = vmatmul.msk.f32.gmra.mxu0 %vm252_vm1, %v4413_v20 }
 0x1f3   : > { %v2365_v36 = vadd.f32 %v2271_v35, %v2079_v34  ;;  %2750 = vxpose.xlu0.b32.start [1/16] (narrow) %v2718_v59, 32  ;;  %v1793_v63 = vadd.f32 %v1701_v56, %v5118_v15  ;;  %v5120_v35 = vld [vmem:[#allocation32_spill] sm:$0xff] }
 0x1f5   : > { %v2651_v22 = vadd.f32 %v2557_v2, %v2365_v36  ;;  %3231 = vmatmul.msk.f32.gmra.mxu1 %vm252_vm1, %v4396_v53  ;;  %3305 = vmatmul.msk.f32.gmra.mxu2 %vm252_vm1, %v4401_v40  ;;  %v3338_v53 = vld [vmem:[%s3710_s26 + $0x111] sm:$0xff] }
 0x1f7   : > { %3379 = vmatmul.msk.f32.gmra.mxu3 %vm252_vm1, %v3337_v7  ;;  %v2687_v32 = vadd.f32 %v4811_v11, %v2651_v22  ;;  %v2560_v24 = vpop.f32.mrf.mxu0 }
 0x1f8   : > { %v1988_v30 = vpop.f32.mrf.mxu2 }
 0x1f9   : > { %v2080_v29 = vadd.f32 %v1988_v30, %v1793_v63  ;;  %v2719_v48 = vmax.f32 %v2687_v32, 0.0 }
 0x1fa   : > { %v1704_v41 = vpop.f32.mrf.mxu1  ;;  %v2274_v44 = vpop.f32.mrf.mxu3  ;;  %3453 = vmatmul.msk.f32.gmra.mxu0 %vm252_vm1, %v4439_v9 }
 0x1fb   : > { %v2366_v50 = vadd.f32 %v2274_v44, %v2080_v29  ;;  %2751 = vxpose.xlu0.b32.cont [2/16] (narrow) %v2719_v48, 32  ;;  %v1794_v8 = vadd.f32 %v1704_v41, %v5119_v55  ;;  %v5121_v48 = vld [vmem:[#allocation33_spill] sm:$0xff] }
 0x1fd   : > { %v2652_v40 = vadd.f32 %v2560_v24, %v2366_v50  ;;  %3232 = vmatmul.msk.f32.gmra.mxu1 %vm252_vm1, %v4413_v20  ;;  %3306 = vmatmul.msk.f32.gmra.mxu2 %vm252_vm1, %v4418_v0  ;;  %v3339_v20 = vld [vmem:[%s3710_s26 + $0x121] sm:$0xff] }
 0x1ff   : > { %3380 = vmatmul.msk.f32.gmra.mxu3 %vm252_vm1, %v3338_v53  ;;  %v2688_v45 = vadd.f32 %v4811_v11, %v2652_v40  ;;  %v2563_v54 = vpop.f32.mrf.mxu0 }
 0x200   : > { %v1991_v23 = vpop.f32.mrf.mxu2 }
 0x201   : > { %v2081_v2 = vadd.f32 %v1991_v23, %v1794_v8  ;;  %v2720_v43 = vmax.f32 %v2688_v45, 0.0  ;;  %v5122_v23 = vld [vmem:[#allocation34_spill] sm:$0xff] }
 0x202   : > { %v1707_v34 = vpop.f32.mrf.mxu1  ;;  %v2277_v59 = vpop.f32.mrf.mxu3  ;;  %3454 = vmatmul.msk.f32.gmra.mxu0 %vm252_vm1, %v4459_v61 }
 0x203   : > { %v2367_v56 = vadd.f32 %v2277_v59, %v2081_v2  ;;  %2752 = vxpose.xlu0.b32.cont [3/16] (narrow) %v2720_v43, 32  ;;  %v1795_v36 = vadd.f32 %v1707_v34, %v5120_v35  ;;  %v3194_v35 = vld [vmem:[%s3710_s26 + $0x12a] sm:$0xff] }
 0x205   : > { %v2653_v0 = vadd.f32 %v2563_v54, %v2367_v56  ;;  %3233 = vmatmul.msk.f32.gmra.mxu1 %vm252_vm1, %v4439_v9  ;;  %3307 = vmatmul.msk.f32.gmra.mxu2 %vm252_vm1, %v4444_v21  ;;  %v3340_v9 = vld [vmem:[%s3710_s26 + $0x129] sm:$0xff]  ;;  %v3341_v54 = vld [vmem:[%s3710_s26 + $0x139] sm:$0xff] }
 0x207   : > { %3381 = vmatmul.msk.f32.gmra.mxu3 %vm252_vm1, %v3339_v20  ;;  %v2689_v7 = vadd.f32 %v4811_v11, %v2653_v0  ;;  %v2566_v22 = vpop.f32.mrf.mxu0 }
 0x208   : > { %v1994_v15 = vpop.f32.mrf.mxu2 }
 0x209   : > { %v2082_v63 = vadd.f32 %v1994_v15, %v1795_v36  ;;  %v2721_v32 = vmax.f32 %v2689_v7, 0.0  ;;  %v3342_v36 = vld [vmem:[%s3710_s26 + $0x141] sm:$0xff]  ;;  %v5123_v7 = vld [vmem:[#allocation35_spill] sm:$0xff] }
 0x20a   : > { %v1710_v24 = vpop.f32.mrf.mxu1  ;;  %v2280_v30 = vpop.f32.mrf.mxu3  ;;  %3455 = vmatmul.msk.f32.gmra.mxu0 %vm252_vm1, %v4476_v5 }
 0x20b   : > { %v2368_v29 = vadd.f32 %v2280_v30, %v2082_v63  ;;  %2753 = vxpose.xlu0.b32.cont [4/16] (narrow) %v2721_v32, 32  ;;  %v1796_v41 = vadd.f32 %v1710_v24, %v5121_v48 }
 0x20d   : > { %v2654_v21 = vadd.f32 %v2566_v22, %v2368_v29  ;;  %3234 = vmatmul.msk.f32.gmra.mxu1 %vm252_vm1, %v4459_v61  ;;  %3308 = vmatmul.msk.f32.gmra.mxu2 %vm252_vm1, %v4464_v31 }
 0x20f   : > { %3382 = vmatmul.msk.f32.gmra.mxu3 %vm252_vm1, %v3340_v9  ;;  %v2690_v44 = vadd.f32 %v4811_v11, %v2654_v21  ;;  %v2569_v50 = vpop.f32.mrf.mxu0  ;;  %v5124_v21 = vld [vmem:[#allocation38_spill] sm:$0xff] }
 0x210   : > { %v1997_v53 = vpop.f32.mrf.mxu2 }
 0x211   : > { %v2083_v40 = vadd.f32 %v1997_v53, %v1796_v41  ;;  %v2722_v55 = vmax.f32 %v2690_v44, 0.0  ;;  %v3343_v41 = vld [vmem:[%s3710_s26 + $0x151] sm:$0xff] }
 0x212   : > { %v1713_v8 = vpop.f32.mrf.mxu1  ;;  %v2283_v45 = vpop.f32.mrf.mxu3  ;;  %3456 = vmatmul.msk.f32.gmra.mxu0 %vm252_vm1, %v4496_v52  ;;  %v5125_v44 = vld [vmem:[#allocation36_spill] sm:$0xff] }
 0x213   : > { %v2369_v61 = vadd.f32 %v2283_v45, %v2083_v40  ;;  %2754 = vxpose.xlu0.b32.cont [5/16] (narrow) %v2722_v55, 32  ;;  %v1797_v2 = vadd.f32 %v1713_v8, %v5122_v23  ;;  %v5126_v23 = vld [vmem:[#allocation37_spill] sm:$0xff] }
 0x215   : > { %v2655_v31 = vadd.f32 %v2569_v50, %v2369_v61  ;;  %3235 = vmatmul.msk.f32.gmra.mxu1 %vm252_vm1, %v4476_v5  ;;  %3309 = vmatmul.msk.f32.gmra.mxu2 %vm252_vm1, %v4481_v16 }
 0x217   : > { %3383 = vmatmul.msk.f32.gmra.mxu3 %vm252_vm1, %v3341_v54  ;;  %v2691_v43 = vadd.f32 %v4811_v11, %v2655_v31  ;;  %v2572_v34 = vpop.f32.mrf.mxu0 }
 0x218   : > { %v2000_v52 = vpop.f32.mrf.mxu2 }
 0x219   : > { %v2084_v59 = vadd.f32 %v2000_v52, %v1797_v2  ;;  %v2723_v56 = vmax.f32 %v2691_v43, 0.0 }
 0x21a   : > { %v1716_v20 = vpop.f32.mrf.mxu1  ;;  %v2286_v0 = vpop.f32.mrf.mxu3  ;;  %3457 = vmatmul.msk.f32.gmra.mxu0 %vm252_vm1, %v4519_v57 }
 0x21b   : > { %v2370_v5 = vadd.f32 %v2286_v0, %v2084_v59  ;;  %2755 = vxpose.xlu0.b32.cont [6/16] (narrow) %v2723_v56, 32  ;;  %v1798_v22 = vadd.f32 %v1716_v20, %v5123_v7  ;;  %v3197_v0 = vld [vmem:[%s3710_s26 + $0x152] sm:$0xff] }
 0x21d   : > { %v2656_v16 = vadd.f32 %v2572_v34, %v2370_v5  ;;  %3236 = vmatmul.msk.f32.gmra.mxu1 %vm252_vm1, %v3194_v35  ;;  %3310 = vmatmul.msk.f32.gmra.mxu2 %vm252_vm1, %v4504_v39  ;;  %v3271_v35 = vld [vmem:[%s3710_s26 + $0x168] sm:$0xff] }
 0x21f   : > { %3384 = vmatmul.msk.f32.gmra.mxu3 %vm252_vm1, %v3342_v36  ;;  %v2692_v15 = vadd.f32 %v4811_v11, %v2656_v16  ;;  %v2575_v63 = vpop.f32.mrf.mxu0  ;;  %v5127_v16 = vld [vmem:[#allocation39_spill] sm:$0xff] }
 0x220   : > { %v2003_v32 = vpop.f32.mrf.mxu2 }
 0x221   : > { %v2085_v24 = vadd.f32 %v2003_v32, %v1798_v22  ;;  %v2724_v30 = vmax.f32 %v2692_v15, 0.0 }
 0x222   : > { %v1719_v29 = vpop.f32.mrf.mxu1  ;;  %v2289_v9 = vpop.f32.mrf.mxu3  ;;  %3458 = vmatmul.msk.f32.gmra.mxu0 %vm252_vm1, %v5124_v21 }
 0x223   : > { %v2371_v48 = vadd.f32 %v2289_v9, %v2085_v24  ;;  %2756 = vxpose.xlu0.b32.cont [7/16] (narrow) %v2724_v30, 32  ;;  %v1799_v50 = vadd.f32 %v1719_v29, %v5125_v44  ;;  %v3198_v29 = vld [vmem:[%s3710_s26 + $0x15a] sm:$0xff] }
 0x225   : > { %v2657_v39 = vadd.f32 %v2575_v63, %v2371_v48  ;;  %3237 = vmatmul.msk.f32.gmra.mxu1 %vm252_vm1, %v4519_v57  ;;  %3311 = vmatmul.msk.f32.gmra.mxu2 %vm252_vm1, %v4527_v1  ;;  %v3344_v1 = vld [vmem:[%s3710_s26 + $0x159] sm:$0xff] }
 0x227   : > { %3385 = vmatmul.msk.f32.gmra.mxu3 %vm252_vm1, %v3343_v41  ;;  %v2693_v53 = vadd.f32 %v4811_v11, %v2657_v39  ;;  %v2578_v40 = vpop.f32.mrf.mxu0  ;;  %v5128_v41 = vld [vmem:[#allocation40_spill] sm:$0xff] }
 0x228   : > { %v2006_v55 = vpop.f32.mrf.mxu2 }
 0x229   : > { %v2086_v8 = vadd.f32 %v2006_v55, %v1799_v50  ;;  %v2725_v45 = vmax.f32 %v2693_v53, 0.0 }
 0x22a   : > { %v1722_v61 = vpop.f32.mrf.mxu1  ;;  %v2292_v54 = vpop.f32.mrf.mxu3  ;;  %3459 = vmatmul.msk.f32.gmra.mxu0 %vm252_vm1, %v4556_v37 }
 0x22b   : > { %v2372_v57 = vadd.f32 %v2292_v54, %v2086_v8  ;;  %2757 = vxpose.xlu0.b32.cont [8/16] (narrow) %v2725_v45, 32  ;;  %v1800_v2 = vadd.f32 %v1722_v61, %v5126_v23  ;;  %v3199_v45 = vld [vmem:[%s3710_s26 + $0x16a] sm:$0xff]  ;;  %v3273_v61 = vld [vmem:[%s3710_s26 + $0x180] sm:$0xff] }
 0x22d   : > { %v2658_v31 = vadd.f32 %v2578_v40, %v2372_v57  ;;  %3238 = vmatmul.msk.f32.gmra.mxu1 %vm252_vm1, %v5124_v21  ;;  %3312 = vmatmul.msk.f32.gmra.mxu2 %vm252_vm1, %v4544_v27  ;;  %v3345_v27 = vld [vmem:[%s3710_s26 + $0x169] sm:$0xff]  ;;  %v3346_v21 = vld [vmem:[%s3710_s26 + $0x171] sm:$0xff]  ;;  %v5129_v57 = vld [vmem:[#allocation41_spill] sm:$0xff] }
 0x22f   : > { %3386 = vmatmul.msk.f32.gmra.mxu3 %vm252_vm1, %v3344_v1  ;;  %v2694_v43 = vadd.f32 %v4811_v11, %v2658_v31  ;;  %v2581_v37 = vpop.f32.mrf.mxu0 }
 0x230   : > { %v2009_v34 = vpop.f32.mrf.mxu2 }
 0x231   : > { %v2087_v52 = vadd.f32 %v2009_v34, %v1800_v2  ;;  %v2726_v59 = vmax.f32 %v2694_v43, 0.0  ;;  %v3421_v2 = vld [vmem:[%s3710_s26 + $0x182] sm:$0xff] }
 0x232   : > { %v1725_v56 = vpop.f32.mrf.mxu1  ;;  %v2295_v20 = vpop.f32.mrf.mxu3  ;;  %3460 = vmatmul.msk.f32.gmra.mxu0 %vm252_vm1, %v4570_v62 }
 0x233   : > { %v2373_v5 = vadd.f32 %v2295_v20, %v2087_v52  ;;  %2758 = vxpose.xlu0.b32.cont [9/16] (narrow) %v2726_v59, 32  ;;  %v1801_v7 = vadd.f32 %v1725_v56, %v5127_v16  ;;  %v3200_v59 = vld [vmem:[%s3710_s26 + $0x172] sm:$0xff]  ;;  %v3274_v56 = vld [vmem:[%s3710_s26 + $0x188] sm:$0xff] }
 0x235   : > { %v2659_v36 = vadd.f32 %v2581_v37, %v2373_v5  ;;  %3239 = vmatmul.msk.f32.gmra.mxu1 %vm252_vm1, %v3197_v0  ;;  %3313 = vmatmul.msk.f32.gmra.mxu2 %vm252_vm1, %v3271_v35 }
 0x237   : > { %3387 = vmatmul.msk.f32.gmra.mxu3 %vm252_vm1, %v3345_v27  ;;  %v2695_v22 = vadd.f32 %v4811_v11, %v2659_v36  ;;  %v2584_v15 = vpop.f32.mrf.mxu0  ;;  %v3422_v36 = vld [vmem:[%s3710_s26 + $0x18a] sm:$0xff] }
 0x238   : > { %v2012_v63 = vpop.f32.mrf.mxu2 }
 0x239   : > { %v2088_v32 = vadd.f32 %v2012_v63, %v1801_v7  ;;  %v2727_v62 = vmax.f32 %v2695_v22, 0.0 }
 0x23a   : > { %v1728_v24 = vpop.f32.mrf.mxu1  ;;  %v2298_v30 = vpop.f32.mrf.mxu3  ;;  %3461 = vmatmul.msk.f32.gmra.mxu0 %vm252_vm1, %v4587_v17 }
 0x23b   : > { %v2374_v9 = vadd.f32 %v2298_v30, %v2088_v32  ;;  %2759 = vxpose.xlu0.b32.cont [10/16] (narrow) %v2727_v62, 32  ;;  %v1802_v39 = vadd.f32 %v1728_v24, %v5128_v41  ;;  %v3275_v32 = vld [vmem:[%s3710_s26 + $0x198] sm:$0xff] }
 0x23c   : > { %v3349_v24 = vld [vmem:[%s3710_s26 + $0x199] sm:$0xff] }
 0x23d   : > { %v2660_v48 = vadd.f32 %v2584_v15, %v2374_v9  ;;  %3240 = vmatmul.msk.f32.gmra.mxu1 %vm252_vm1, %v3198_v29  ;;  %3314 = vmatmul.msk.f32.gmra.mxu2 %vm252_vm1, %v4575_v38 }
 0x23f   : > { %3388 = vmatmul.msk.f32.gmra.mxu3 %vm252_vm1, %v3346_v21  ;;  %v2696_v44 = vadd.f32 %v4811_v11, %v2660_v48  ;;  %v2587_v50 = vpop.f32.mrf.mxu0  ;;  %v3423_v48 = vld [vmem:[%s3710_s26 + $0x19a] sm:$0xff] }
 0x240   : > { %v2015_v53 = vpop.f32.mrf.mxu2 }
 0x241   : > { %v2089_v17 = vadd.f32 %v2015_v53, %v1802_v39  ;;  %v2728_v40 = vmax.f32 %v2696_v44, 0.0 }
 0x242   : > { %v1731_v55 = vpop.f32.mrf.mxu1  ;;  %v2301_v8 = vpop.f32.mrf.mxu3  ;;  %3462 = vmatmul.msk.f32.gmra.mxu0 %vm252_vm1, %v4603_v10 }
 0x243   : > { %v2375_v38 = vadd.f32 %v2301_v8, %v2089_v17  ;;  %2760 = vxpose.xlu0.b32.cont [11/16] (narrow) %v2728_v40, 32  ;;  %v1803_v1 = vadd.f32 %v1731_v55, %v5129_v57  ;;  %v3276_v17 = vld [vmem:[%s3710_s26 + $0x1a0] sm:$0xff] }
 0x244   : > { %v3350_v55 = vld [vmem:[%s3710_s26 + $0x1a1] sm:$0xff] }
 0x245   : > { %v2661_v54 = vadd.f32 %v2587_v50, %v2375_v38  ;;  %3241 = vmatmul.msk.f32.gmra.mxu1 %vm252_vm1, %v3199_v45  ;;  %3315 = vmatmul.msk.f32.gmra.mxu2 %vm252_vm1, %v3273_v61 }
 0x247   : > { %3389 = vmatmul.msk.f32.gmra.mxu3 %vm252_vm1, %v4600_v42  ;;  %v2697_v31 = vadd.f32 %v4811_v11, %v2661_v54  ;;  %v2590_v23 = vpop.f32.mrf.mxu0  ;;  %v5130_v42 = vld [vmem:[#allocation42_spill] sm:$0xff] }
 0x248   : > { %v2018_v43 = vpop.f32.mrf.mxu2  ;;  %v3424_v54 = vld [vmem:[%s3710_s26 + $0x1a2] sm:$0xff]  ;;  %s161_s26 = sand.u32 1, %s3597_s13  }
 0x249   : > { %v2090_v10 = vadd.f32 %v2018_v43, %v1803_v1  ;;  %v2729_v37 = vmax.f32 %v2697_v31, 0.0  ;;  %s2904_s17 = sshll.u32 %s161_s26, 6  ;;  %s2823_s30 = scalar_lea.sflag [#allocation3], %s161_s26 }
 0x24a   : > { %v1734_v34 = vpop.f32.mrf.mxu1  ;;  %v2304_v52 = vpop.f32.mrf.mxu3  ;;  %3463 = vmatmul.msk.f32.gmra.mxu0 %vm252_vm1, %v3421_v2  ;;  %s163_s19 = scalar_lea.vmem [#allocation2], %s2904_s17 }
 0x24b   : > { %v2376_v20 = vadd.f32 %v2304_v52, %v2090_v10  ;;  %2761 = vxpose.xlu0.b32.cont [12/16] (narrow) %v2729_v37, 32  ;;  %v1804_v35 = vadd.f32 %v1734_v34, %v5130_v42  ;;  %s2835_s28 = sshll.u32 %s163_s19, 4  ;;  %s2836_s28 = int_to_ptr.vmem [resolvable:$true] %s2835_s28 }
 0x24d   : > { %v2662_v0 = vadd.f32 %v2590_v23, %v2376_v20  ;;  %3242 = vmatmul.msk.f32.gmra.mxu1 %vm252_vm1, %v3200_v59  ;;  %3316 = vmatmul.msk.f32.gmra.mxu2 %vm252_vm1, %v3274_v56 }
 0x24f   : > { %3390 = vmatmul.msk.f32.gmra.mxu3 %vm252_vm1, %v4617_v12  ;;  %v2698_v5 = vadd.f32 %v4811_v11, %v2662_v0  ;;  %v2593_v27 = vpop.f32.mrf.mxu0  ;;  %v5131_v12 = vld [vmem:[#allocation43_spill] sm:$0xff] }
 0x250   : > { %v2021_v16 = vpop.f32.mrf.mxu2 }
 0x251   : > { %v2091_v7 = vadd.f32 %v2021_v16, %v1804_v35  ;;  %v2730_v22 = vmax.f32 %v2698_v5, 0.0 }
 0x252   : > { %v1737_v15 = vpop.f32.mrf.mxu1  ;;  %v2307_v63 = vpop.f32.mrf.mxu3  ;;  %3464 = vmatmul.msk.f32.gmra.mxu0 %vm252_vm1, %v3422_v36 }
 0x253   : > { %v2377_v62 = vadd.f32 %v2307_v63, %v2091_v7  ;;  %2762 = vxpose.xlu0.b32.cont [13/16] (narrow) %v2730_v22, 32  ;;  %v1805_v29 = vadd.f32 %v1737_v15, %v5131_v12 }
 0x255   : > { %v2663_v30 = vadd.f32 %v2593_v27, %v2377_v62  ;;  %3243 = vmatmul.msk.f32.gmra.mxu1 %vm252_vm1, %v3421_v2  ;;  %3317 = vmatmul.msk.f32.gmra.mxu2 %vm252_vm1, %v3275_v32 }
 0x257   : > { %3391 = vmatmul.msk.f32.gmra.mxu3 %vm252_vm1, %v3349_v24  ;;  %v2699_v9 = vadd.f32 %v4811_v11, %v2663_v30  ;;  %v2596_v21 = vpop.f32.mrf.mxu0 }
 0x258   : > { %v2024_v41 = vpop.f32.mrf.mxu2 }
 0x259   : > { %v2092_v39 = vadd.f32 %v2024_v41, %v1805_v29  ;;  %v2731_v44 = vmax.f32 %v2699_v9, 0.0 }
 0x25a   : > { %v1740_v50 = vpop.f32.mrf.mxu1  ;;  %v2310_v53 = vpop.f32.mrf.mxu3  ;;  %3465 = vmatmul.msk.f32.gmra.mxu0 %vm252_vm1, %v3423_v48 }
 0x25b   : > { %v2378_v40 = vadd.f32 %v2310_v53, %v2092_v39  ;;  %2763 = vxpose.xlu0.b32.cont [14/16] (narrow) %v2731_v44, 32  ;;  %v1806_v45 = vadd.f32 %v1740_v50, %v4622_v51 }
 0x25d   : > { %v2664_v8 = vadd.f32 %v2596_v21, %v2378_v40  ;;  %3244 = vmatmul.msk.f32.gmra.mxu1 %vm252_vm1, %v3422_v36  ;;  %3318 = vmatmul.msk.f32.gmra.mxu2 %vm252_vm1, %v3276_v17 }
 0x25f   : > { %3392 = vmatmul.msk.f32.gmra.mxu3 %vm252_vm1, %v3350_v55  ;;  %v2700_v61 = vadd.f32 %v4811_v11, %v2664_v8  ;;  %v2599_v38 = vpop.f32.mrf.mxu0 }
 0x260   : > { %v2027_v57 = vpop.f32.mrf.mxu2 }
 0x261   : > { %v2093_v1 = vadd.f32 %v2027_v57, %v1806_v45  ;;  %v2732_v31 = vmax.f32 %v2700_v61, 0.0 }
 0x262   : > { %v1743_v23 = vpop.f32.mrf.mxu1  ;;  %v2313_v2 = vpop.f32.mrf.mxu3  ;;  %3466 = vmatmul.msk.f32.gmra.mxu0 %vm252_vm1, %v3424_v54 }
 0x263   : > { %v2379_v43 = vadd.f32 %v2313_v2, %v2093_v1  ;;  %2764 = vxpose.xlu0.b32.cont [15/16] (narrow) %v2732_v31, 32  ;;  %v1807_v37 = vadd.f32 %v1743_v23, %v4633_v18 }
 0x265   : > { %v2665_v10 = vadd.f32 %v2599_v38, %v2379_v43 }
 0x267   : > { %v2701_v51 = vadd.f32 %v4811_v11, %v2665_v10  ;;  %v2602_v34 = vpop.f32.mrf.mxu0 }
 0x268   : > { %v2030_v52 = vpop.f32.mrf.mxu2 }
 0x269   : > { %v2094_v59 = vadd.f32 %v2030_v52, %v1807_v37  ;;  %v2733_v56 = vmax.f32 %v2701_v51, 0.0 }
 0x26a   : > { %v1746_v20 = vpop.f32.mrf.mxu1  ;;  %v2316_v0 = vpop.f32.mrf.mxu3 }
 0x26b   : > { %v2380_v42 = vadd.f32 %v2316_v0, %v2094_v59  ;;  %2765 = vxpose.xlu0.b32.end [16/16] (narrow) %v2733_v56, 32  ;;  %v1808_v5 = vadd.f32 %v1746_v20, %v4644_v28 }
 0x26d   : > { %v2666_v35 = vadd.f32 %v2602_v34, %v2380_v42 }
 0x26f   : > { %v2702_v27 = vadd.f32 %v4811_v11, %v2666_v35  ;;  %v2605_v36 = vpop.f32.mrf.mxu0 }
 0x270   : > { %v2033_v16 = vpop.f32.mrf.mxu2 }
 0x271   : > { %v2095_v7 = vadd.f32 %v2033_v16, %v1808_v5  ;;  %v2734_v22 = vmax.f32 %v2702_v27, 0.0 }
 0x272   : > { %v1749_v18 = vpop.f32.mrf.mxu1  ;;  %v2319_v15 = vpop.f32.mrf.mxu3 }
 0x273   : > { %v2381_v63 = vadd.f32 %v2319_v15, %v2095_v7  ;;  %2782 = vxpose.xlu1.b32.start [1/16] (narrow) %v2734_v22, 32  ;;  %v1809_v62 = vadd.f32 %v1749_v18, %v4655_v33 }
 0x275   : > { %v2667_v32 = vadd.f32 %v2605_v36, %v2381_v63 }
 0x277   : > { %v2703_v24 = vadd.f32 %v4811_v11, %v2667_v32  ;;  %v2608_v30 = vpop.f32.mrf.mxu0 }
 0x278   : > { %v2036_v12 = vpop.f32.mrf.mxu2 }
 0x279   : > { %v2096_v29 = vadd.f32 %v2036_v12, %v1809_v62  ;;  %v2735_v9 = vmax.f32 %v2703_v24, 0.0 }
 0x27a   : > { %v1752_v28 = vpop.f32.mrf.mxu1  ;;  %v2322_v21 = vpop.f32.mrf.mxu3 }
 0x27b   : > { %v2382_v48 = vadd.f32 %v2322_v21, %v2096_v29  ;;  %2783 = vxpose.xlu1.b32.cont [2/16] (narrow) %v2735_v9, 32  ;;  %v1810_v39 = vadd.f32 %v1752_v28, %v4666_v6 }
 0x27d   : > { %v2668_v41 = vadd.f32 %v2608_v30, %v2382_v48 }
 0x27f   : > { %v2704_v44 = vadd.f32 %v4811_v11, %v2668_v41  ;;  %v2611_v50 = vpop.f32.mrf.mxu0 }
 0x280   : > { %v2039_v53 = vpop.f32.mrf.mxu2 }
 0x281   : > { %v2097_v17 = vadd.f32 %v2039_v53, %v1810_v39  ;;  %v2736_v40 = vmax.f32 %v2704_v44, 0.0 }
 0x282   : > { %v1755_v33 = vpop.f32.mrf.mxu1  ;;  %v2325_v55 = vpop.f32.mrf.mxu3 }
 0x283   : > { %v2383_v8 = vadd.f32 %v2325_v55, %v2097_v17  ;;  %2784 = vxpose.xlu1.b32.cont [3/16] (narrow) %v2736_v40, 32  ;;  %v1811_v61 = vadd.f32 %v1755_v33, %v4677_v4 }
 0x285   : > { %v2669_v45 = vadd.f32 %v2611_v50, %v2383_v8 }
 0x287   : > { %v2705_v38 = vadd.f32 %v4811_v11, %v2669_v45  ;;  %v2614_v54 = vpop.f32.mrf.mxu0 }
 0x288   : > { %v2042_v57 = vpop.f32.mrf.mxu2 }
 0x289   : > { %v2098_v1 = vadd.f32 %v2042_v57, %v1811_v61  ;;  %v2737_v31 = vmax.f32 %v2705_v38, 0.0 }
 0x28a   : > { %v1758_v6 = vpop.f32.mrf.mxu1  ;;  %v2328_v23 = vpop.f32.mrf.mxu3 }
 0x28b   : > { %v2384_v2 = vadd.f32 %v2328_v23, %v2098_v1  ;;  %2785 = vxpose.xlu1.b32.cont [4/16] (narrow) %v2737_v31, 32  ;;  %v1812_v10 = vadd.f32 %v1758_v6, %v4688_v26 }
 0x28d   : > { %v2670_v43 = vadd.f32 %v2614_v54, %v2384_v2 }
 0x28f   : > { %v2706_v37 = vadd.f32 %v4811_v11, %v2670_v43  ;;  %v2617_v51 = vpop.f32.mrf.mxu0 }
 0x290   : > { %v2045_v34 = vpop.f32.mrf.mxu2 }
 0x291   : > { %v2099_v52 = vadd.f32 %v2045_v34, %v1812_v10  ;;  %v2738_v59 = vmax.f32 %v2706_v37, 0.0 }
 0x292   : > { %v1761_v4 = vpop.f32.mrf.mxu1  ;;  %v2331_v56 = vpop.f32.mrf.mxu3 }
 0x293   : > { %v2385_v20 = vadd.f32 %v2331_v56, %v2099_v52  ;;  %2786 = vxpose.xlu1.b32.cont [5/16] (narrow) %v2738_v59, 32  ;;  %v1813_v42 = vadd.f32 %v1761_v4, %v4699_v60 }
 0x295   : > { %v2671_v0 = vadd.f32 %v2617_v51, %v2385_v20 }
 0x297   : > { %v2707_v35 = vadd.f32 %v4811_v11, %v2671_v0  ;;  %v2620_v5 = vpop.f32.mrf.mxu0 }
 0x298   : > { %v2048_v27 = vpop.f32.mrf.mxu2 }
 0x299   : > { %v2100_v36 = vadd.f32 %v2048_v27, %v1813_v42  ;;  %v2739_v16 = vmax.f32 %v2707_v35, 0.0 }
 0x29a   : > { %v1764_v26 = vpop.f32.mrf.mxu1  ;;  %v2334_v7 = vpop.f32.mrf.mxu3 }
 0x29b   : > { %v2386_v22 = vadd.f32 %v2334_v7, %v2100_v36  ;;  %2787 = vxpose.xlu1.b32.cont [6/16] (narrow) %v2739_v16, 32  ;;  %v1814_v15 = vadd.f32 %v1764_v26, %v4710_v19 }
 0x29d   : > { %v2672_v18 = vadd.f32 %v2620_v5, %v2386_v22 }
 0x29f   : > { %v2708_v63 = vadd.f32 %v4811_v11, %v2672_v18  ;;  %v2623_v32 = vpop.f32.mrf.mxu0 }
 0x2a0   : > { %v2051_v62 = vpop.f32.mrf.mxu2 }
 0x2a1   : > { %v2101_v24 = vadd.f32 %v2051_v62, %v1814_v15  ;;  %v2740_v30 = vmax.f32 %v2708_v63, 0.0 }
 0x2a2   : > { %v1767_v60 = vpop.f32.mrf.mxu1  ;;  %v2337_v12 = vpop.f32.mrf.mxu3 }
 0x2a3   : > { %v2387_v29 = vadd.f32 %v2337_v12, %v2101_v24  ;;  %2788 = vxpose.xlu1.b32.cont [7/16] (narrow) %v2740_v30, 32  ;;  %v1815_v28 = vadd.f32 %v1767_v60, %v4721_v46 }
 0x2a5   : > { %v2673_v9 = vadd.f32 %v2623_v32, %v2387_v29 }
 0x2a7   : > { %v2709_v21 = vadd.f32 %v4811_v11, %v2673_v9  ;;  %v2626_v48 = vpop.f32.mrf.mxu0 }
 0x2a8   : > { %v2054_v41 = vpop.f32.mrf.mxu2 }
 0x2a9   : > { %v2102_v39 = vadd.f32 %v2054_v41, %v1815_v28  ;;  %v2741_v44 = vmax.f32 %v2709_v21, 0.0 }
 0x2aa   : > { %v1770_v19 = vpop.f32.mrf.mxu1  ;;  %v2340_v50 = vpop.f32.mrf.mxu3 }
 0x2ab   : > { %v2388_v53 = vadd.f32 %v2340_v50, %v2102_v39  ;;  %2789 = vxpose.xlu1.b32.cont [8/16] (narrow) %v2741_v44, 32  ;;  %v1816_v40 = vadd.f32 %v1770_v19, %v4732_v25 }
 0x2ad   : > { %v2674_v17 = vadd.f32 %v2626_v48, %v2388_v53 }
 0x2af   : > { %v2710_v33 = vadd.f32 %v4811_v11, %v2674_v17  ;;  %v2629_v55 = vpop.f32.mrf.mxu0 }
 0x2b0   : > { %v2057_v8 = vpop.f32.mrf.mxu2 }
 0x2b1   : > { %v2103_v45 = vadd.f32 %v2057_v8, %v1816_v40  ;;  %v2742_v61 = vmax.f32 %v2710_v33, 0.0 }
 0x2b2   : > { %v1773_v46 = vpop.f32.mrf.mxu1  ;;  %v2343_v38 = vpop.f32.mrf.mxu3 }
 0x2b3   : > { %v2389_v54 = vadd.f32 %v2343_v38, %v2103_v45  ;;  %2790 = vxpose.xlu1.b32.cont [9/16] (narrow) %v2742_v61, 32  ;;  %v1817_v1 = vadd.f32 %v1773_v46, %v4743_v13 }
 0x2b5   : > { %v2675_v57 = vadd.f32 %v2629_v55, %v2389_v54 }
 0x2b7   : > { %v2711_v31 = vadd.f32 %v4811_v11, %v2675_v57  ;;  %v2632_v6 = vpop.f32.mrf.mxu0  ;;  %v2766_v57 = vpop.trf.xlu0 }
 0x2b8   : > { %v2060_v23 = vpop.f32.mrf.mxu2  ;;  %2814 = vst [vmem:[%s163_s19] sm:$0xff] %v2766_v57 }
 0x2b9   : > { %v2104_v2 = vadd.f32 %v2060_v23, %v1817_v1  ;;  %v2743_v43 = vmax.f32 %v2711_v31, 0.0 }
 0x2ba   : > { %v1776_v25 = vpop.f32.mrf.mxu1  ;;  %v2346_v10 = vpop.f32.mrf.mxu3 }
 0x2bb   : > { %v2390_v37 = vadd.f32 %v2346_v10, %v2104_v2  ;;  %2791 = vxpose.xlu1.b32.cont [10/16] (narrow) %v2743_v43, 32  ;;  %v1818_v34 = vadd.f32 %v1776_v25, %v4754_v3 }
 0x2bd   : > { %v2676_v51 = vadd.f32 %v2632_v6, %v2390_v37 }
 0x2bf   : > { %v2712_v52 = vadd.f32 %v4811_v11, %v2676_v51  ;;  %v2635_v59 = vpop.f32.mrf.mxu0 }
 0x2c0   : > { %v2063_v4 = vpop.f32.mrf.mxu2 }
 0x2c1   : > { %v2105_v56 = vadd.f32 %v2063_v4, %v1818_v34  ;;  %v2744_v20 = vmax.f32 %v2712_v52, 0.0 }
 0x2c2   : > { %v1779_v13 = vpop.f32.mrf.mxu1  ;;  %v2349_v0 = vpop.f32.mrf.mxu3 }
 0x2c3   : > { %v2391_v42 = vadd.f32 %v2349_v0, %v2105_v56  ;;  %2792 = vxpose.xlu1.b32.cont [11/16] (narrow) %v2744_v20, 32  ;;  %v1819_v5 = vadd.f32 %v1779_v13, %v4765_v58 }
 0x2c5   : > { %v2677_v35 = vadd.f32 %v2635_v59, %v2391_v42 }
 0x2c7   : > { %v2713_v27 = vadd.f32 %v4811_v11, %v2677_v35  ;;  %v2638_v36 = vpop.f32.mrf.mxu0 }
 0x2c8   : > { %v2066_v16 = vpop.f32.mrf.mxu2 }
 0x2c9   : > { %v2106_v26 = vadd.f32 %v2066_v16, %v1819_v5  ;;  %v2745_v7 = vmax.f32 %v2713_v27, 0.0 }
 0x2ca   : > { %v1782_v3 = vpop.f32.mrf.mxu1  ;;  %v2352_v22 = vpop.f32.mrf.mxu3 }
 0x2cb   : > { %v2392_v18 = vadd.f32 %v2352_v22, %v2106_v26  ;;  %2793 = vxpose.xlu1.b32.cont [12/16] (narrow) %v2745_v7, 32  ;;  %v1820_v63 = vadd.f32 %v1782_v3, %v4776_v14 }
 0x2cd   : > { %v2678_v15 = vadd.f32 %v2638_v36, %v2392_v18 }
 0x2cf   : > { %v2714_v32 = vadd.f32 %v4811_v11, %v2678_v15  ;;  %v2641_v62 = vpop.f32.mrf.mxu0 }
 0x2d0   : > { %v2069_v24 = vpop.f32.mrf.mxu2 }
 0x2d1   : > { %v2107_v30 = vadd.f32 %v2069_v24, %v1820_v63  ;;  %v2746_v60 = vmax.f32 %v2714_v32, 0.0 }
 0x2d2   : > { %v1785_v58 = vpop.f32.mrf.mxu1  ;;  %v2355_v12 = vpop.f32.mrf.mxu3 }
 0x2d3   : > { %v2393_v29 = vadd.f32 %v2355_v12, %v2107_v30  ;;  %2794 = vxpose.xlu1.b32.cont [13/16] (narrow) %v2746_v60, 32  ;;  %v1821_v28 = vadd.f32 %v1785_v58, %v4787_v47 }
 0x2d5   : > { %v2679_v9 = vadd.f32 %v2641_v62, %v2393_v29 }
 0x2d7   : > { %v2715_v21 = vadd.f32 %v4811_v11, %v2679_v9  ;;  %v2644_v41 = vpop.f32.mrf.mxu0 }
 0x2d8   : > { %v2072_v48 = vpop.f32.mrf.mxu2 }
 0x2d9   : > { %v2108_v39 = vadd.f32 %v2072_v48, %v1821_v28  ;;  %v2747_v44 = vmax.f32 %v2715_v21, 0.0 }
 0x2da   : > { %v2358_v14 = vpop.f32.mrf.mxu3  ;;  %v1788_v50 = vpop.f32.mrf.mxu1 }
 0x2db   : > { %v2394_v19 = vadd.f32 %v2358_v14, %v2108_v39  ;;  %2795 = vxpose.xlu1.b32.cont [14/16] (narrow) %v2747_v44, 32  ;;  %v1822_v17 = vadd.f32 %v1788_v50, %v4798_v49  ;;  %v2767_v49 = vpop.trf.xlu0 }
 0x2dc   : > { %2816 = vst [vmem:[%s163_s19 + $0x10] sm:$0xff] %v2767_v49 }
 0x2dd   : > { %v2680_v53 = vadd.f32 %v2644_v41, %v2394_v19 }
 0x2df   : > { %v2716_v40 = vadd.f32 %v4811_v11, %v2680_v53  ;;  %v2647_v45 = vpop.f32.mrf.mxu0 }
 0x2e0   : > { %v2075_v33 = vpop.f32.mrf.mxu2 }
 0x2e1   : > { %v2109_v55 = vadd.f32 %v2075_v33, %v1822_v17  ;;  %v2748_v8 = vmax.f32 %v2716_v40, 0.0 }
 0x2e2   : > { %v2361_v47 = vpop.f32.mrf.mxu3 }
 0x2e3   : > { %v2395_v61 = vadd.f32 %v2361_v47, %v2109_v55  ;;  %2796 = vxpose.xlu1.b32.cont [15/16] (narrow) %v2748_v8, 32  ;;  %v2768_v1 = vpop.trf.xlu0 }
 0x2e4   : > { %2818 = vst [vmem:[%s163_s19 + $0x20] sm:$0xff] %v2768_v1 }
 0x2e5   : > { %v2681_v46 = vadd.f32 %v2647_v45, %v2395_v61 }
 0x2e7   : > { %v2717_v38 = vadd.f32 %v4811_v11, %v2681_v46 }
 0x2e9   : > { %v2749_v54 = vmax.f32 %v2717_v38, 0.0 }
 0x2eb   : > { %2797 = vxpose.xlu1.b32.end [16/16] (narrow) %v2749_v54, 32  ;;  %v2769_v31 = vpop.trf.xlu0 }
 0x2ec   : > { %2820 = vst [vmem:[%s163_s19 + $0x30] sm:$0xff] %v2769_v31 }
 0x317   : > { %v2798_v6 = vpop.trf.xlu1 }
 0x318   : > { %2815 = vst [vmem:[%s163_s19 + $0x8] sm:$0xff] %v2798_v6 }
 0x31f   : > { %v2799_v23 = vpop.trf.xlu1 }
 0x320   : > { %2817 = vst [vmem:[%s163_s19 + $0x18] sm:$0xff] %v2799_v23 }
 0x327   : > { %v2800_v11 = vpop.trf.xlu1 }
 0x328   : > { %2819 = vst [vmem:[%s163_s19 + $0x28] sm:$0xff] %v2800_v11 }
 0x32f   : > { %v2801_v2 = vpop.trf.xlu1 }
 0x330   : > { %2821 = vst [vmem:[%s163_s19 + $0x38] sm:$0xff] %v2801_v2 }
 0x331   : > { %3570 = shalt.err (!%p3567_p3)
}
 0x332   : > { %s3607_s10 = smov 256   ;;  %s3608_s11 = smov 16  }
 0x333   : > { %3501 = dma.vmem_to_hbm [thread:$0]  (%p3667_p5), %s2836_s28, 1024, %s2838_s29, %s2823_s30, %s3607_s10, %s3607_s10, %s3608_s11  }
 0x334 PF: > { %p3507_p4 = scmp.ge.s32.totalorder %s3605_s15, 2  ;;  %s2852_s26 = sand.u32 1, %s3593_s12  }
 0x335   : > { %s2853_s17 = scalar_lea.sflag [#allocation3], %s2852_s26 }
 0x336   : > { %p3504_p7 = pnand %p3507_p4, %p3671_p6 }
 0x338   : > { %p3505_p8 = pneg %p3504_p7 }
 0x33a   : > { %3588 = dma.done.wait (%p3505_p8), %s2853_s17, 1024  }
 0x33b   : > { %3590 = vsyncadd (%p3505_p8), %s2853_s17, 4294966272  ;;  %p13_p9 = scmp.ge.s32.totalorder %s3654_s18, 4   ;;  %s5132_s12 = smov %s3597_s13 }
 0x33c   : > { %s5133_s13 = smov %s3601_s14  ;;  %s5134_s14 = smov %s3665_s21 }
 0x33d   : > { %s5135_s15 = smov %s3654_s18  ;;  %15 = sbr.rel (!%p13_p9) target bundleno = 3 (0x3), region = 77 }
 0x342   :  { %2859 = vsyncpa [#allocation3], 1 }
 0x343   :  { %2861 = vsyncpa [#allocation3 + $0x1], 1 }

</bundles_post_ra>
